<compile_context>
chip_gen: v6e
topology: v6e:2x2x1
jax: 0.10.0
libtpu: 0.0.40
codegen_flags: <defaults>
</compile_context>

<pallas_src>
import jax
import jax.numpy as jnp
from jax.experimental import pallas as pl
from jax.experimental.pallas import tpu as pltpu

C, H, W = 512, 5, 5
N = C * H * W  # 12800


def film_kernel(cond_ref, w_ref, fm_ref, out_ref):
    # cond_ref: (B, K+1)  -- last column is the constant 1.0 that folds the bias
    # w_ref:    (K+1, 2*tn) -- [W_hadamard tile | W_addition tile], bias row last
    # fm_ref / out_ref: (B, tn)
    tn = out_ref.shape[1]
    cond = cond_ref[...].astype(w_ref.dtype)          # no-op for f32 weights
    gb = jnp.dot(cond, w_ref[...], preferred_element_type=jnp.float32)
    gamma = gb[:, :tn]                                 # static, lane-aligned slice
    beta = gb[:, tn:]
    out_ref[...] = fm_ref[...] * gamma + beta


def init_params(key, number_known_classes):
    """Deterministic init matching nn.Linear(number_known_classes, 12800) shapes.

    PyTorch Linear stores weight as (out, in); we store the transpose (in, out)
    so the kernel can consume it directly.
    """
    k1, k2, k3, k4 = jax.random.split(key, 4)
    bound = 1.0 / jnp.sqrt(number_known_classes)
    wh = jax.random.uniform(k1, (number_known_classes, N), jnp.float32, -bound, bound)
    bh = jax.random.uniform(k2, (N,), jnp.float32, -bound, bound)
    wa = jax.random.uniform(k3, (number_known_classes, N), jnp.float32, -bound, bound)
    ba = jax.random.uniform(k4, (N,), jnp.float32, -bound, bound)
    return wh, bh, wa, ba


def fuse_film_params(params, *, tn=N // 2, weight_dtype=jnp.float32):
    """Host-side (one-time) fusion of the two Linear layers.

    Returns (w_fused, tn) where w_fused has shape (K+1, 2N):
      - biases are appended as an extra input row (matched by a constant-1
        column appended to the condition vector),
      - for each output tile j the columns are laid out as
        [W_hadamard[:, j*tn:(j+1)*tn] | W_addition[:, j*tn:(j+1)*tn]]
        so one contiguous (K+1, 2*tn) block feeds a single MXU matmul.
    """
    wh, bh, wa, ba = params
    K = wh.shape[0]
    assert N % tn == 0
    nb = N // tn
    wh_aug = jnp.concatenate([wh, bh[None, :]], axis=0)   # (K+1, N)
    wa_aug = jnp.concatenate([wa, ba[None, :]], axis=0)   # (K+1, N)
    wh_blk = wh_aug.reshape(K + 1, nb, tn)
    wa_blk = wa_aug.reshape(K + 1, nb, tn)
    w_fused = jnp.concatenate([wh_blk, wa_blk], axis=-1)  # (K+1, nb, 2*tn)
    return w_fused.reshape(K + 1, 2 * N).astype(weight_dtype), tn


def simple_film_layer(feature_map, condition_vector, w_fused, *, tn=N // 2,
                      alias_feature_map=False):
    """feature_map: (B, 512, 5, 5) f32; condition_vector: (B, K) f32."""
    B = feature_map.shape[0]
    K1 = w_fused.shape[0]                    # K + 1 (bias row folded in)
    assert N % tn == 0 and w_fused.shape == (K1, 2 * N)
    nb = N // tn                             # default 2: one block per v7x TC

    cond_aug = jnp.concatenate(
        [condition_vector, jnp.ones((B, 1), condition_vector.dtype)], axis=1)
    assert cond_aug.shape[1] == K1
    fm_flat = feature_map.reshape(B, N)      # channel-major, matches torch reshape

    out_flat = pl.pallas_call(
        film_kernel,
        out_shape=jax.ShapeDtypeStruct((B, N), jnp.float32),
        grid_spec=pltpu.PrefetchScalarGridSpec(
            num_scalar_prefetch=0,
            grid=(nb,),
            in_specs=[
                pl.BlockSpec((B, K1), lambda j: (0, 0)),       # cond (tiny, resident)
                pl.BlockSpec((K1, 2 * tn), lambda j: (0, j)),  # fused weight tile
                pl.BlockSpec((B, tn), lambda j: (0, j)),       # feature-map tile
            ],
            out_specs=pl.BlockSpec((B, tn), lambda j: (0, j)),
        ),
        compiler_params=pltpu.CompilerParams(
            dimension_semantics=("parallel",),   # v7x: 2 blocks -> 2 TensorCores
        ),
        input_output_aliases=({2: 0} if alias_feature_map else {}),
    )(cond_aug, w_fused, fm_flat)

    return out_flat.reshape(B, C, H, W)


def reference_film(feature_map, condition_vector, params, *, weight_dtype=jnp.float32):
    """Pure-JAX reference (optionally with weights/cond quantized to weight_dtype)."""
    wh, bh, wa, ba = params
    B = feature_map.shape[0]

    def q(x):
        return x.astype(weight_dtype).astype(jnp.float32)

    cv = q(condition_vector)
    gamma = (cv @ q(wh) + q(bh)).reshape(B, C, H, W)
    beta = (cv @ q(wa) + q(ba)).reshape(B, C, H, W)
    return feature_map * gamma + beta


if __name__ == "__main__":
    number_known_classes = 10
    batch = 2

    key = jax.random.PRNGKey(0)
    kp, kf, kc = jax.random.split(key, 3)

    params = init_params(kp, number_known_classes)
    feature_map = jax.random.normal(kf, (batch, C, H, W), jnp.float32)
    condition_vector = jax.random.normal(kc, (batch, number_known_classes), jnp.float32)

    # Default path: f32 weights, grid=(2,) with tn=6400.
    w_fused, tn = fuse_film_params(params)
    out = simple_film_layer(feature_map, condition_vector, w_fused, tn=tn)
    out = jax.block_until_ready(out)
    ref = reference_film(feature_map, condition_vector, params)
    assert out.shape == (batch, C, H, W)
    assert jnp.allclose(out, ref, atol=1e-4, rtol=1e-4)

    # bf16-weight path (halves the dominant HBM traffic on v5e/v6e); compared
    # against a matched-precision reference.
    w_bf16, tn_bf16 = fuse_film_params(params, weight_dtype=jnp.bfloat16)
    out_bf16 = jax.block_until_ready(
        simple_film_layer(feature_map, condition_vector, w_bf16, tn=tn_bf16))
    ref_bf16 = reference_film(feature_map, condition_vector, params,
                              weight_dtype=jnp.bfloat16)
    assert jnp.allclose(out_bf16, ref_bf16, atol=1e-3, rtol=1e-3)

    print("KERNEL_OK")
</pallas_src>

<mosaic_0001>
module attributes {stable_mosaic.version = 11 : i64} {
  func.func @film_kernel(%arg0: i32, %arg1: memref<2x11xf32, #tpu.memory_space<vmem>>, %arg2: memref<11x12800xf32, #tpu.memory_space<vmem>>, %arg3: memref<2x6400xf32, #tpu.memory_space<vmem>>, %arg4: memref<2x6400xf32, #tpu.memory_space<vmem>>) attributes {dimension_semantics = [#tpu.dimension_semantics<parallel>], iteration_bounds = array<i64: 2>, scalar_prefetch = 0 : i64, scratch_operands = 0 : i64, tpu.core_type = #tpu.core_type<tc>, window_params = [{pipeline_mode = #tpu.pipeline_mode<synchronous>, transform_indices = @transform_0, window_bounds = array<i64: 2, 11>}, {transform_indices = @transform_1, window_bounds = array<i64: 11, 12800>}, {transform_indices = @transform_2, window_bounds = array<i64: 2, 6400>}, {transform_indices = @transform_3, window_bounds = array<i64: 2, 6400>}]} {
    %c0 = arith.constant 0 : index
    %c0_0 = arith.constant 0 : index
    %0 = vector.load %arg1[%c0, %c0_0] : memref<2x11xf32, #tpu.memory_space<vmem>>, vector<2x11xf32>
    %c0_1 = arith.constant 0 : index
    %c0_2 = arith.constant 0 : index
    %1 = vector.load %arg2[%c0_1, %c0_2] : memref<11x12800xf32, #tpu.memory_space<vmem>>, vector<11x12800xf32>
    %cst = arith.constant dense<0.000000e+00> : vector<2x12800xf32>
    %2 = tpu.matmul %0, %1, %cst {dimension_numbers = #tpu.dot_dimension_numbers<[1], [0], [0], [1], [0, 0, 1, 1], [], []>} : vector<2x11xf32>, vector<11x12800xf32>, vector<2x12800xf32> -> vector<2x12800xf32>
    %3 = vector.extract_strided_slice %2 {offsets = [0, 0], sizes = [2, 6400], strides = [1, 1]} : vector<2x12800xf32> to vector<2x6400xf32>
    %4 = vector.extract_strided_slice %2 {offsets = [0, 6400], sizes = [2, 6400], strides = [1, 1]} : vector<2x12800xf32> to vector<2x6400xf32>
    %c0_3 = arith.constant 0 : index
    %c0_4 = arith.constant 0 : index
    %5 = vector.load %arg3[%c0_3, %c0_4] : memref<2x6400xf32, #tpu.memory_space<vmem>>, vector<2x6400xf32>
    %6 = arith.mulf %5, %3 : vector<2x6400xf32>
    %7 = arith.addf %6, %4 : vector<2x6400xf32>
    %c0_5 = arith.constant 0 : index
    %c0_6 = arith.constant 0 : index
    %8 = vector.load %arg4[%c0_5, %c0_6] : memref<2x6400xf32, #tpu.memory_space<vmem>>, vector<2x6400xf32>
    tpu.vector_store %arg4[%c0_5, %c0_6], %7 {strides = array<i32>} : memref<2x6400xf32, #tpu.memory_space<vmem>>, vector<2x6400xf32>,
    return
  }
  func.func @transform_0(%arg0: i32) -> (i32, i32) {
    %c0_i32 = arith.constant 0 : i32
    %c0_i32_0 = arith.constant 0 : i32
    %c0_i32_1 = arith.constant 0 : i32
    return %c0_i32, %c0_i32_0 : i32, i32
  }
  func.func @transform_1(%arg0: i32) -> (i32, i32) {
    %c0_i32 = arith.constant 0 : i32
    %c0_i32_0 = arith.constant 0 : i32
    return %c0_i32, %arg0 : i32, i32
  }
  func.func @transform_2(%arg0: i32) -> (i32, i32) {
    %c0_i32 = arith.constant 0 : i32
    %c0_i32_0 = arith.constant 0 : i32
    return %c0_i32, %arg0 : i32, i32
  }
  func.func @transform_3(%arg0: i32) -> (i32, i32) {
    %c0_i32 = arith.constant 0 : i32
    %c0_i32_0 = arith.constant 0 : i32
    return %c0_i32, %arg0 : i32, i32
  }
}

</mosaic_0001>

<bundles_post_ra>
// kernel: tpu_custom_call.1
= control target key start
LH: loop header
LB: loop body
LE: loop exit
PB: predicated region body
PF: predicated region fallthrough
CT: control target
= control target key end

     0   :  { %8 = vsyncpa [#allocation3], 0  ;;  %s6326_s0 = inlined_call_operand.hbm [shape: f32[2,11], index: 0, kind: input, shape index: {}]   ;;  %s6327_s1 = inlined_call_operand.hbm [shape: f32[11,25600], index: 1, kind: input, shape index: {}]   ;;  %s6328_s2 = inlined_call_operand.hbm [shape: f32[2,12800], index: 2, kind: input, shape index: {}]   ;;  %s6329_s3 = inlined_call_operand.hbm [shape: f32[2,12800], index: 3, kind: output, shape index: {}]  }
   0x1   :  { %9 = vsyncpa [#allocation6], 0 }
   0x2   :  { %11 = vsyncpa [#allocation6 + $0x1], 0 }
   0x3   :  { %12 = vsyncpa [#allocation4], 0 }
   0x4   :  { %14 = vsyncpa [#allocation4 + $0x1], 0  ;;  %s5431_s12 = smov 0   ;;  %s5433_s13 = smov 0  }
   0x5   :  { %s5435_s14 = smov 0   ;;  %s5437_s15 = smov 0  }
   0x6 LB: > { %s5452_s16 = sadd.s32 1, %s5400_s15   ;;  %s48_s17 = sadd.s32 1, %s5396_s14  ;;  %s5400_s15 = sphi %s5437_s15, %s6351_s15   ;;  %s5396_s14 = sphi %s5435_s14, %s6350_s14   ;;  %s5392_s13 = sphi %s5433_s13, %s6349_s13   ;;  %s5388_s12 = sphi %s5431_s12, %s6348_s12  }
   0x7   : > { %s45_s18 = ssub.s32 %s5400_s15, %s5452_s16  ;;  %p55_p0 = scmp.ne.s32.totalorder %s5396_s14, %s5392_s13 }
   0x8   : > { %p46_p1 = scmp.eq.s32.totalorder %s45_s18, 0  ;;  %p56_p2 = scmp.eq.s32.totalorder %s5400_s15, 0 }
   0x9   : > { %p5209_p4 = scmp.lt.s32.totalorder %s5400_s15, 2  ;;  %s148_s20 = sand.u32 1, %s5400_s15  }
   0xa   : > { %s5463_s19 = scalar_select %p46_p1, %s5396_s14, %s48_s17  }
   0xb   : > { %p57_p5 = por %p56_p2, %p55_p0  ;;  %s150_s21 = sand.u32 1, %s5396_s14  }
   0xc   : > { %s5179_s22 = smul.u32 1600, %s150_s21  ;;  %s5484_s30 = scalar_lea.sflag [#allocation6], %s148_s20 }
   0xd   : > { %p5472_p6 = pnand %p5209_p4, %p57_p5  ;;  %s5176_s24 = smul.u32 12800, %s5400_s15 }
   0xe   : > { %s152_s28 = scalar_lea.vmem [#allocation5], %s5179_s22  ;;  %s5255_s7 = scalar_lea.hbm %s6327_s1, 51200 }
   0xf   : > { %s5480_s27 = scalar_lea.hbm %s6327_s1, %s5176_s24  ;;  %s159_s29 = sshll.u32 %s152_s28, 4  ;;  %s5482_s29 = int_to_ptr.vmem [resolvable:$true] %s159_s29 }
  0x10   : > { %s5250_s4 = scalar_lea.hbm %s5480_s27, 25600  ;;  %p6331_p8 = pneg %p5472_p6 }
  0x11   : > { %p5251_p7 = scmp.ne.s32.totalorder %s5480_s27, %s5250_s4  ;;  %p5256_p11 = scmp.lt.s32.totalorder %s5480_s27, %s6327_s1 }
  0x12   : > { %p5257_p12 = scmp.lt.s32.totalorder %s5255_s7, %s5250_s4 }
  0x13   : > { %p5253_p9 = pnand %p6331_p8, %p5251_p7 }
  0x14   : > { %p5258_p13 = por %p5257_p12, %p5256_p11 }
  0x15   : > { %p5254_p10 = pneg %p5253_p9 }
  0x17   : > { %p5259_p1 = pnand %p5258_p13, %p5254_p10 }
  0x19   : > { %5262 = shalt.err (!%p5259_p1)
}
  0x1a   : > { %s5263_s10 = scalar_lea.vmem %s5482_s29, 25600  ;;  %s5402_s11 = smov [#allocation5]  }
  0x1b   : > { %p5264_p2 = scmp.ne.s32.totalorder %s5482_s29, %s5263_s10  ;;  %s5268_s17 = sshll.u32 %s5402_s11, 4  ;;  %s5269_s17 = int_to_ptr.vmem [resolvable:$false] %s5268_s17 }
  0x1c   : > { %s5270_s18 = scalar_lea.vmem %s5269_s17, 51200  ;;  %p5271_p7 = scmp.lt.s32.totalorder %s5482_s29, %s5269_s17 }
  0x1d   : > { %p5266_p4 = pnand %p5264_p2, %p6331_p8  ;;  %p5272_p9 = scmp.lt.s32.totalorder %s5270_s18, %s5263_s10 }
  0x1f   : > { %p5267_p5 = pneg %p5266_p4  ;;  %p5273_p3 = por %p5272_p9, %p5271_p7 }
  0x21   : > { %p5274_p11 = pnand %p5273_p3, %p5267_p5 }
  0x23   : > { %5277 = shalt.err (!%p5274_p11)
}
  0x24   : > { %s5403_s20 = smov 25600   ;;  %s5404_s22 = smov 12800  }
  0x25   : > { %s5405_s24 = smov 800   ;;  %s5512_s25 = sadd.s32 4294967295, %s5400_s15  }
  0x26   : > { %5200 = dma.hbm_to_vmem [thread:$0]  (!%p5472_p6), %s5480_s27, 25600, %s5482_s29, %s5484_s30, %s5403_s20, %s5404_s22, %s5405_s24  }
  0x27   : > { %s5015_s26 = sadd.s32 4294967294, %s5400_s15   ;;  %p61_p3 = scmp.ne.s32.totalorder %s5392_s13, %s5388_s12 }
  0x28   : > { %p6330_p10 = scmp.eq.s32.totalorder %s5512_s25, 0  ;;  %p111_p12 = scmp.eq.s32.totalorder %s5512_s25, 1 }
  0x29   : > { %p117_p13 = scmp.eq.s32.totalorder %s5015_s26, 1  ;;  %p5016_p1 = scmp.ge.s32.totalorder %s5400_s15, 1 }
  0x2a   : > { %p5522_p2 = por %p6330_p10, %p61_p3  ;;  %p5529_p4 = por %p111_p12, %p55_p0 }
  0x2b   : > { %p5533_p5 = por %p117_p13, %p61_p3  ;;  %p124_p7 = scmp.lt.s32.totalorder %s5400_s15, 3 }
  0x2c   : > { %s6335_s28 = scalar_select %p5522_p2, 1, 0 }
  0x2d   : > { %s6336_s27 = scalar_select %p5529_p4, 1, 0 }
  0x2e   : > { %s6337_s29 = scalar_select %p5533_p5, 1, 0 }
  0x2f   : > { %p5538_p9 = pnand %p5016_p1, %p124_p7  ;;  %s5406_s5 = smov [#allocation2]  }
  0x30   : > { %s137_s6 = sshll.u32 %s5406_s5, 4  ;;  %s5180_s7 = smul.u32 100, %s150_s21  ;;  %s138_s6 = int_to_ptr.vmem [resolvable:$true] %s137_s6 }
  0x31   : > { %p5193_p11 = pneg %p5538_p9  ;;  %s5177_s8 = smul.u32 1600, %s5400_s15 }
  0x32   : > { %s173_s18 = scalar_lea.vmem [#allocation7], %s5180_s7  ;;  %s5289_s21 = scalar_lea.vmem %s138_s6, 32 }
  0x33   : > { %p5549_p0 = pnand %p5193_p11, %p6330_p10  ;;  %s5556_s17 = scalar_lea.hbm %s6328_s2, %s5177_s8 }
  0x34   : > { %s181_s20 = sshll.u32 %s173_s18, 4  ;;  %p5290_p12 = scmp.ne.s32.totalorder %s138_s6, %s5289_s21  ;;  %s5558_s20 = int_to_ptr.vmem [resolvable:$true] %s181_s20 }
  0x35   : > { %p5280_p3 = pneg %p5549_p0  ;;  %p5297_p7 = scmp.lt.s32.totalorder %s138_s6, %s138_s6 }
  0x36   : > { %p5298_p11 = scmp.lt.s32.totalorder %s5289_s21, %s5289_s21 }
  0x37   : > { %p5292_p13 = pnand %p5290_p12, %p5280_p3 }
  0x38   : > { %p5299_p10 = por %p5298_p11, %p5297_p7 }
  0x39   : > { %p5293_p1 = pneg %p5292_p13 }
  0x3b   : > { %p5300_p8 = pnand %p5299_p10, %p5293_p1 }
  0x3d   : > { %5303 = shalt.err (!%p5300_p8)
}
  0x3e   : > { %5196 = dma.hbm_to_vmem [thread:$0]  (!%p5549_p0), %s6326_s0, 32, %s138_s6, [#allocation3]  }
  0x3f   : > { %s5304_s26 = scalar_lea.hbm %s5556_s17, 1600  ;;  %p6340_p3 = pneg %p5472_p6 }
  0x40   : > { %p5305_p5 = scmp.ne.s32.totalorder %s5556_s17, %s5304_s26  ;;  %s5309_s8 = scalar_lea.hbm %s6328_s2, 3200 }
  0x41   : > { %p5310_p8 = scmp.lt.s32.totalorder %s5556_s17, %s6328_s2  ;;  %p5311_p10 = scmp.lt.s32.totalorder %s5309_s8, %s5304_s26 }
  0x42   : > { %p5307_p12 = pnand %p5305_p5, %p6340_p3 }
  0x43   : > { %p5312_p1 = por %p5311_p10, %p5310_p8 }
  0x44   : > { %p5308_p13 = pneg %p5307_p12 }
  0x46   : > { %p5313_p7 = pnand %p5312_p1, %p5308_p13 }
  0x48   : > { %5316 = shalt.err (!%p5313_p7)
}
  0x49   : > { %s5317_s6 = scalar_lea.vmem %s5558_s20, 1600  ;;  %p6341_p5 = pmov %p6340_p3 }
  0x4a   : > { %p5318_p0 = scmp.ne.s32.totalorder %s5558_s20, %s5317_s6  ;;  %s5407_s11 = smov [#allocation7]  }
  0x4b   : > { %s5322_s18 = sshll.u32 %s5407_s11, 4  ;;  %s5323_s18 = int_to_ptr.vmem [resolvable:$false] %s5322_s18 }
  0x4c   : > { %p5320_p11 = pnand %p5318_p0, %p6341_p5  ;;  %s5324_s21 = scalar_lea.vmem %s5323_s18, 3200 }
  0x4d   : > { %p5325_p12 = scmp.lt.s32.totalorder %s5558_s20, %s5323_s18  ;;  %p5326_p4 = scmp.lt.s32.totalorder %s5324_s21, %s5317_s6 }
  0x4e   : > { %p5321_p3 = pneg %p5320_p11 }
  0x4f   : > { %p5327_p2 = por %p5326_p4, %p5325_p12 }
  0x51   : > { %p5328_p8 = pnand %p5327_p2, %p5321_p3 }
  0x53   : > { %5331 = shalt.err (!%p5328_p8)
}
  0x54   : > { %5203 = dma.hbm_to_vmem [thread:$0]  (!%p5472_p6), %s5556_s17, 1600, %s5558_s20, %s5484_s30  }
  0x55   : > { %190 = sbr.rel (%p5538_p9) target bundleno = 462 (0x1ce), region = 32  ;;  %p6342_p13 = scmp.eq.s32.totalorder (!%p5538_p9), %s5512_s25, 0 }
  0x5a   : > { %5375 = dma.done.wait (%p6342_p13), [#allocation3], 32   ;;  %p6343_p10 = pmov %p6342_p13 }
  0x5b   : > { %s196_s22 = sand.u32 1, %s5512_s25   ;;  %s5598_s24 = sand.u32 1, %s5392_s13  }
  0x5c   : > { %5377 = vsyncadd (%p6343_p10), [#allocation3], 4294967264  ;;  %s5181_s23 = smul.u32 1600, %s5598_s24  ;;  %s197_s26 = scalar_lea.sflag [#allocation6], %s196_s22 }
  0x5d   : > { %p6344_p6 = scmp.ne.s32.totalorder %s6335_s28, 0 }
  0x5e   : > { %s5601_s5 = scalar_lea.vmem [#allocation5], %s5181_s23 }
  0x5f   : > { %5379 = dma.done.wait (%p6344_p6), %s197_s26, 27200  }
  0x60   : > { %5381 = vsyncadd (%p6344_p6), %s197_s26, 4294940096  ;;  %v5408_v0 = vmov 0.0   ;;  %vm445_vm0 = vcmask 1042432   ;;  %v342_v1 = vld [vmem:[%s5601_s5 + $0x328] sm:$0x7]  ;;  %v244_v6 = vld [vmem:[%s5601_s5 + $0x18] sm:$0xff] }
  0x61   : > { %810 = vmatprep.mubr.f32.mxu0 %v5408_v0  ;;  %881 = vmatprep.mubr.f32.mxu1 %v5408_v0  ;;  %v344_v2 = vld [vmem:[%s5601_s5 + $0x338] sm:$0x7]  ;;  %v341_v3 = vld [vmem:[%s5601_s5 + $0x320] sm:$0x7]  ;;  %v343_v4 = vld [vmem:[%s5601_s5 + $0x330] sm:$0x7] }
  0x62   : > { %5023 = vmatprep.subr.msk.mxu0 %vm445_vm0, %v342_v1  ;;  %5026 = vmatprep.subr.msk.mxu1 %vm445_vm0, %v344_v2  ;;  %v242_v5 = vld [vmem:[%s5601_s5 + $0x8] sm:$0xff]  ;;  %v241_v7 = vld [vmem:[%s5601_s5] sm:$0xff]  ;;  %v243_v8 = vld [vmem:[%s5601_s5 + $0x10] sm:$0xff]  ;;  %vm441_vm1 = vcmask 89088   ;;  %s5182_s30 = smul.u32 100, %s5598_s24  ;;  %s4899_s9 = scalar_lea.sflag [#allocation4], %s5598_s24 }
  0x63   : > { %5024 = vmatpush1.msk.msra.mxu0 %vm445_vm0, %v341_v3  ;;  %5027 = vmatpush1.msk.msra.mxu1 %vm445_vm0, %v343_v4  ;;  %v5621_v9 = vld [vmem:[#allocation2] sm:$0x3]  ;;  %v346_v10 = vld [vmem:[%s5601_s5 + $0x348] sm:$0x7]  ;;  %v348_v11 = vld [vmem:[%s5601_s5 + $0x358] sm:$0x7] }
  0x64   : > { %776 = vmatprep.subr.mxu0 %v242_v5  ;;  %847 = vmatprep.subr.mxu1 %v244_v6  ;;  %v345_v12 = vld [vmem:[%s5601_s5 + $0x340] sm:$0x7]  ;;  %v347_v13 = vld [vmem:[%s5601_s5 + $0x350] sm:$0x7]  ;;  %v246_v14 = vld [vmem:[%s5601_s5 + $0x28] sm:$0xff]  ;;  %s6178_s28 = scalar_lea.vmem [#allocation7], %s5182_s30 }
  0x65   : > { %777 = vmatpush1.msra.mxu0 %v241_v7  ;;  %848 = vmatpush1.msra.mxu1 %v243_v8  ;;  %v248_v15 = vld [vmem:[%s5601_s5 + $0x38] sm:$0xff]  ;;  %v245_v16 = vld [vmem:[%s5601_s5 + $0x20] sm:$0xff]  ;;  %v247_v17 = vld [vmem:[%s5601_s5 + $0x30] sm:$0xff]  ;;  %s6194_s4 = scalar_lea.vmem [#allocation8], %s5182_s30  ;;  %s5178_s17 = smul.u32 1600, %s5512_s25 }
  0x66   : > { %5025 = vmatmul.mubr.msk.f32.vlgmr.msra.gmra.mxu0 %vm441_vm1, %v5621_v9  ;;  %5028 = vmatmul.mubr.msk.f32.vlgmr.msra.gmra.mxu1 %vm441_vm1, %v5621_v9  ;;  %v350_v18 = vld [vmem:[%s5601_s5 + $0x368] sm:$0x7]  ;;  %v352_v19 = vld [vmem:[%s5601_s5 + $0x378] sm:$0x7]  ;;  %v349_v20 = vld [vmem:[%s5601_s5 + $0x360] sm:$0x7] }
  0x67   : > { %5029 = vmatprep.subr.msk.mxu0 %vm445_vm0, %v346_v10  ;;  %5032 = vmatprep.subr.msk.mxu1 %vm445_vm0, %v348_v11  ;;  %v351_v21 = vld [vmem:[%s5601_s5 + $0x370] sm:$0x7]  ;;  %v250_v22 = vld [vmem:[%s5601_s5 + $0x48] sm:$0xff]  ;;  %v252_v23 = vld [vmem:[%s5601_s5 + $0x58] sm:$0xff]  ;;  %s4913_s20 = sshll.u32 %s6194_s4, 4  ;;  %s4911_s10 = scalar_lea.hbm %s6329_s3, %s5178_s17  ;;  %s4914_s20 = int_to_ptr.vmem [resolvable:$true] %s4913_s20 }
  0x68   : > { %5030 = vmatpush1.msk.msra.mxu0 %vm445_vm0, %v345_v12  ;;  %5033 = vmatpush1.msk.msra.mxu1 %vm445_vm0, %v347_v13  ;;  %v249_v24 = vld [vmem:[%s5601_s5 + $0x40] sm:$0xff]  ;;  %v251_v25 = vld [vmem:[%s5601_s5 + $0x50] sm:$0xff]  ;;  %v354_v26 = vld [vmem:[%s5601_s5 + $0x388] sm:$0x7]  ;;  %s5332_s6 = scalar_lea.vmem %s4914_s20, 1600  ;;  %p6345_p4 = scmp.ne.s32.totalorder %s6336_s27, 0 }
  0x69   : > { %918 = vmatprep.subr.mxu0 %v246_v14  ;;  %989 = vmatprep.subr.mxu1 %v248_v15  ;;  %v356_v27 = vld [vmem:[%s5601_s5 + $0x398] sm:$0x7]  ;;  %v353_v28 = vld [vmem:[%s5601_s5 + $0x380] sm:$0x7]  ;;  %v355_v29 = vld [vmem:[%s5601_s5 + $0x390] sm:$0x7]  ;;  %p5333_p2 = scmp.ne.s32.totalorder %s4914_s20, %s5332_s6 }
  0x6a   : > { %919 = vmatpush1.msra.mxu0 %v245_v16  ;;  %952 = vmatprep.mubr.f32.mxu0 %v5408_v0  ;;  %v254_v30 = vld [vmem:[%s5601_s5 + $0x68] sm:$0xff]  ;;  %v256_v31 = vld [vmem:[%s5601_s5 + $0x78] sm:$0xff]  ;;  %v253_v32 = vld [vmem:[%s5601_s5 + $0x60] sm:$0xff]  ;;  %s5410_s25 = smov [#allocation8]  }
  0x6b   : > { %990 = vmatpush1.msra.mxu1 %v247_v17  ;;  %1023 = vmatprep.mubr.f32.mxu1 %v5408_v0  ;;  %v255_v33 = vld [vmem:[%s5601_s5 + $0x70] sm:$0xff]  ;;  %v358_v34 = vld [vmem:[%s5601_s5 + $0x3a8] sm:$0x7]  ;;  %v360_v35 = vld [vmem:[%s5601_s5 + $0x3b8] sm:$0x7]  ;;  %p5334_p9 = pnand %p5333_p2, %p6345_p4  ;;  %s5336_s11 = sshll.u32 %s5410_s25, 4  ;;  %s5337_s11 = int_to_ptr.vmem [resolvable:$false] %s5336_s11 }
  0x6c   : > { %5031 = vmatmul.mubr.msk.f32.vlgmr.msra.gmra.mxu0 %vm441_vm1, %v5621_v9  ;;  %5034 = vmatmul.mubr.msk.f32.vlgmr.msra.gmra.mxu1 %vm441_vm1, %v5621_v9  ;;  %v357_v36 = vld [vmem:[%s5601_s5 + $0x3a0] sm:$0x7]  ;;  %v359_v37 = vld [vmem:[%s5601_s5 + $0x3b0] sm:$0x7]  ;;  %v258_v38 = vld [vmem:[%s5601_s5 + $0x88] sm:$0xff]  ;;  %s5338_s18 = scalar_lea.vmem %s5337_s11, 3200  ;;  %p5339_p7 = scmp.lt.s32.totalorder %s4914_s20, %s5337_s11 }
  0x6d   : > { %5035 = vmatprep.subr.msk.mxu0 %vm445_vm0, %v350_v18  ;;  %5038 = vmatprep.subr.msk.mxu1 %vm445_vm0, %v352_v19  ;;  %v260_v39 = vld [vmem:[%s5601_s5 + $0x98] sm:$0xff]  ;;  %v257_v40 = vld [vmem:[%s5601_s5 + $0x80] sm:$0xff]  ;;  %v259_v41 = vld [vmem:[%s5601_s5 + $0x90] sm:$0xff]  ;;  %p5335_p1 = pneg %p5334_p9  ;;  %p5340_p0 = scmp.lt.s32.totalorder %s5338_s18, %s5332_s6 }
  0x6e   : > { %5036 = vmatpush1.msk.msra.mxu0 %vm445_vm0, %v349_v20  ;;  %5039 = vmatpush1.msk.msra.mxu1 %vm445_vm0, %v351_v21  ;;  %v362_v42 = vld [vmem:[%s5601_s5 + $0x3c8] sm:$0x7]  ;;  %v364_v43 = vld [vmem:[%s5601_s5 + $0x3d8] sm:$0x7]  ;;  %v361_v44 = vld [vmem:[%s5601_s5 + $0x3c0] sm:$0x7] }
  0x6f   : > { %1060 = vmatprep.subr.mxu0 %v250_v22  ;;  %1131 = vmatprep.subr.mxu1 %v252_v23  ;;  %v363_v45 = vld [vmem:[%s5601_s5 + $0x3d0] sm:$0x7]  ;;  %v262_v46 = vld [vmem:[%s5601_s5 + $0xa8] sm:$0xff]  ;;  %v264_v47 = vld [vmem:[%s5601_s5 + $0xb8] sm:$0xff]  ;;  %p5341_p5 = por %p5340_p0, %p5339_p7 }
  0x70   : > { %1061 = vmatpush1.msra.mxu0 %v249_v24  ;;  %1094 = vmatprep.mubr.f32.mxu0 %v5408_v0  ;;  %v261_v48 = vld [vmem:[%s5601_s5 + $0xa0] sm:$0xff]  ;;  %v263_v49 = vld [vmem:[%s5601_s5 + $0xb0] sm:$0xff]  ;;  %v366_v50 = vld [vmem:[%s5601_s5 + $0x3e8] sm:$0x7] }
  0x71   : > { %1132 = vmatpush1.msra.mxu1 %v251_v25  ;;  %1165 = vmatprep.mubr.f32.mxu1 %v5408_v0  ;;  %v368_v51 = vld [vmem:[%s5601_s5 + $0x3f8] sm:$0x7]  ;;  %v365_v52 = vld [vmem:[%s5601_s5 + $0x3e0] sm:$0x7]  ;;  %v367_v53 = vld [vmem:[%s5601_s5 + $0x3f0] sm:$0x7]  ;;  %p5342_p11 = pnand %p5341_p5, %p5335_p1 }
  0x72   : > { %5037 = vmatmul.mubr.msk.f32.vlgmr.msra.gmra.mxu0 %vm441_vm1, %v5621_v9  ;;  %5040 = vmatmul.mubr.msk.f32.vlgmr.msra.gmra.mxu1 %vm441_vm1, %v5621_v9  ;;  %v266_v54 = vld [vmem:[%s5601_s5 + $0xc8] sm:$0xff]  ;;  %v268_v55 = vld [vmem:[%s5601_s5 + $0xd8] sm:$0xff]  ;;  %v265_v56 = vld [vmem:[%s5601_s5 + $0xc0] sm:$0xff] }
  0x73   : > { %5041 = vmatprep.subr.msk.mxu0 %vm445_vm0, %v354_v26  ;;  %5044 = vmatprep.subr.msk.mxu1 %vm445_vm0, %v356_v27  ;;  %v267_v57 = vld [vmem:[%s5601_s5 + $0xd0] sm:$0xff]  ;;  %v370_v58 = vld [vmem:[%s5601_s5 + $0x408] sm:$0x7]  ;;  %v372_v59 = vld [vmem:[%s5601_s5 + $0x418] sm:$0x7] }
  0x74   : > { %5042 = vmatpush1.msk.msra.mxu0 %vm445_vm0, %v353_v28  ;;  %5045 = vmatpush1.msk.msra.mxu1 %vm445_vm0, %v355_v29  ;;  %v369_v60 = vld [vmem:[%s5601_s5 + $0x400] sm:$0x7]  ;;  %v371_v61 = vld [vmem:[%s5601_s5 + $0x410] sm:$0x7]  ;;  %v270_v62 = vld [vmem:[%s5601_s5 + $0xe8] sm:$0xff] }
  0x75   : > { %1202 = vmatprep.subr.mxu0 %v254_v30  ;;  %1273 = vmatprep.subr.mxu1 %v256_v31  ;;  %v272_v63 = vld [vmem:[%s5601_s5 + $0xf8] sm:$0xff]  ;;  %v269_v1 = vld [vmem:[%s5601_s5 + $0xe0] sm:$0xff]  ;;  %v271_v2 = vld [vmem:[%s5601_s5 + $0xf0] sm:$0xff] }
  0x76   : > { %1203 = vmatpush1.msra.mxu0 %v253_v32  ;;  %1236 = vmatprep.mubr.f32.mxu0 %v5408_v0  ;;  %v374_v3 = vld [vmem:[%s5601_s5 + $0x428] sm:$0x7]  ;;  %v376_v4 = vld [vmem:[%s5601_s5 + $0x438] sm:$0x7]  ;;  %v373_v5 = vld [vmem:[%s5601_s5 + $0x420] sm:$0x7] }
  0x77   : > { %1274 = vmatpush1.msra.mxu1 %v255_v33  ;;  %1307 = vmatprep.mubr.f32.mxu1 %v5408_v0  ;;  %v375_v6 = vld [vmem:[%s5601_s5 + $0x430] sm:$0x7]  ;;  %v274_v7 = vld [vmem:[%s5601_s5 + $0x108] sm:$0xff]  ;;  %v276_v8 = vld [vmem:[%s5601_s5 + $0x118] sm:$0xff] }
  0x78   : > { %5043 = vmatmul.mubr.msk.f32.vlgmr.msra.gmra.mxu0 %vm441_vm1, %v5621_v9  ;;  %5046 = vmatmul.mubr.msk.f32.vlgmr.msra.gmra.mxu1 %vm441_vm1, %v5621_v9  ;;  %v273_v10 = vld [vmem:[%s5601_s5 + $0x100] sm:$0xff]  ;;  %v275_v11 = vld [vmem:[%s5601_s5 + $0x110] sm:$0xff]  ;;  %v378_v12 = vld [vmem:[%s5601_s5 + $0x448] sm:$0x7] }
  0x79   : > { %5047 = vmatprep.subr.msk.mxu0 %vm445_vm0, %v358_v34  ;;  %5050 = vmatprep.subr.msk.mxu1 %vm445_vm0, %v360_v35  ;;  %v380_v13 = vld [vmem:[%s5601_s5 + $0x458] sm:$0x7]  ;;  %v377_v14 = vld [vmem:[%s5601_s5 + $0x440] sm:$0x7]  ;;  %v379_v15 = vld [vmem:[%s5601_s5 + $0x450] sm:$0x7] }
  0x7a   : > { %5048 = vmatpush1.msk.msra.mxu0 %vm445_vm0, %v357_v36  ;;  %5051 = vmatpush1.msk.msra.mxu1 %vm445_vm0, %v359_v37  ;;  %v278_v16 = vld [vmem:[%s5601_s5 + $0x128] sm:$0xff]  ;;  %v280_v17 = vld [vmem:[%s5601_s5 + $0x138] sm:$0xff]  ;;  %v277_v18 = vld [vmem:[%s5601_s5 + $0x120] sm:$0xff] }
  0x7b   : > { %1344 = vmatprep.subr.mxu0 %v258_v38  ;;  %1415 = vmatprep.subr.mxu1 %v260_v39  ;;  %v279_v19 = vld [vmem:[%s5601_s5 + $0x130] sm:$0xff]  ;;  %v382_v20 = vld [vmem:[%s5601_s5 + $0x468] sm:$0x7]  ;;  %v384_v21 = vld [vmem:[%s5601_s5 + $0x478] sm:$0x7] }
  0x7c   : > { %1345 = vmatpush1.msra.mxu0 %v257_v40  ;;  %1378 = vmatprep.mubr.f32.mxu0 %v5408_v0  ;;  %v381_v22 = vld [vmem:[%s5601_s5 + $0x460] sm:$0x7]  ;;  %v383_v23 = vld [vmem:[%s5601_s5 + $0x470] sm:$0x7]  ;;  %v282_v24 = vld [vmem:[%s5601_s5 + $0x148] sm:$0xff] }
  0x7d   : > { %1416 = vmatpush1.msra.mxu1 %v259_v41  ;;  %1449 = vmatprep.mubr.f32.mxu1 %v5408_v0  ;;  %v284_v25 = vld [vmem:[%s5601_s5 + $0x158] sm:$0xff]  ;;  %v281_v26 = vld [vmem:[%s5601_s5 + $0x140] sm:$0xff]  ;;  %v283_v27 = vld [vmem:[%s5601_s5 + $0x150] sm:$0xff] }
  0x7e   : > { %5049 = vmatmul.mubr.msk.f32.vlgmr.msra.gmra.mxu0 %vm441_vm1, %v5621_v9  ;;  %5052 = vmatmul.mubr.msk.f32.vlgmr.msra.gmra.mxu1 %vm441_vm1, %v5621_v9  ;;  %v386_v28 = vld [vmem:[%s5601_s5 + $0x488] sm:$0x7]  ;;  %v388_v29 = vld [vmem:[%s5601_s5 + $0x498] sm:$0x7]  ;;  %v385_v30 = vld [vmem:[%s5601_s5 + $0x480] sm:$0x7] }
  0x7f   : > { %5053 = vmatprep.subr.msk.mxu0 %vm445_vm0, %v362_v42  ;;  %5056 = vmatprep.subr.msk.mxu1 %vm445_vm0, %v364_v43  ;;  %v387_v31 = vld [vmem:[%s5601_s5 + $0x490] sm:$0x7]  ;;  %v286_v32 = vld [vmem:[%s5601_s5 + $0x168] sm:$0xff]  ;;  %v288_v33 = vld [vmem:[%s5601_s5 + $0x178] sm:$0xff] }
  0x80   : > { %5054 = vmatpush1.msk.msra.mxu0 %vm445_vm0, %v361_v44  ;;  %5057 = vmatpush1.msk.msra.mxu1 %vm445_vm0, %v363_v45  ;;  %v285_v34 = vld [vmem:[%s5601_s5 + $0x160] sm:$0xff]  ;;  %v287_v35 = vld [vmem:[%s5601_s5 + $0x170] sm:$0xff]  ;;  %v390_v36 = vld [vmem:[%s5601_s5 + $0x4a8] sm:$0x7] }
  0x81   : > { %1486 = vmatprep.subr.mxu0 %v262_v46  ;;  %1557 = vmatprep.subr.mxu1 %v264_v47  ;;  %v392_v37 = vld [vmem:[%s5601_s5 + $0x4b8] sm:$0x7]  ;;  %v389_v38 = vld [vmem:[%s5601_s5 + $0x4a0] sm:$0x7]  ;;  %v391_v39 = vld [vmem:[%s5601_s5 + $0x4b0] sm:$0x7] }
  0x82   : > { %1487 = vmatpush1.msra.mxu0 %v261_v48  ;;  %1520 = vmatprep.mubr.f32.mxu0 %v5408_v0  ;;  %v290_v40 = vld [vmem:[%s5601_s5 + $0x188] sm:$0xff]  ;;  %v292_v41 = vld [vmem:[%s5601_s5 + $0x198] sm:$0xff]  ;;  %v289_v42 = vld [vmem:[%s5601_s5 + $0x180] sm:$0xff] }
  0x83   : > { %1558 = vmatpush1.msra.mxu1 %v263_v49  ;;  %1591 = vmatprep.mubr.f32.mxu1 %v5408_v0  ;;  %v291_v43 = vld [vmem:[%s5601_s5 + $0x190] sm:$0xff]  ;;  %v394_v44 = vld [vmem:[%s5601_s5 + $0x4c8] sm:$0x7]  ;;  %v396_v45 = vld [vmem:[%s5601_s5 + $0x4d8] sm:$0x7] }
  0x84   : > { %5055 = vmatmul.mubr.msk.f32.vlgmr.msra.gmra.mxu0 %vm441_vm1, %v5621_v9  ;;  %5058 = vmatmul.mubr.msk.f32.vlgmr.msra.gmra.mxu1 %vm441_vm1, %v5621_v9  ;;  %v393_v46 = vld [vmem:[%s5601_s5 + $0x4c0] sm:$0x7]  ;;  %v395_v47 = vld [vmem:[%s5601_s5 + $0x4d0] sm:$0x7]  ;;  %v294_v48 = vld [vmem:[%s5601_s5 + $0x1a8] sm:$0xff] }
  0x85   : > { %5059 = vmatprep.subr.msk.mxu0 %vm445_vm0, %v366_v50  ;;  %5062 = vmatprep.subr.msk.mxu1 %vm445_vm0, %v368_v51  ;;  %v296_v49 = vld [vmem:[%s5601_s5 + $0x1b8] sm:$0xff]  ;;  %v293_v50 = vld [vmem:[%s5601_s5 + $0x1a0] sm:$0xff]  ;;  %v295_v51 = vld [vmem:[%s5601_s5 + $0x1b0] sm:$0xff] }
  0x86   : > { %5060 = vmatpush1.msk.msra.mxu0 %vm445_vm0, %v365_v52  ;;  %5063 = vmatpush1.msk.msra.mxu1 %vm445_vm0, %v367_v53  ;;  %v398_v52 = vld [vmem:[%s5601_s5 + $0x4e8] sm:$0x7]  ;;  %v400_v53 = vld [vmem:[%s5601_s5 + $0x4f8] sm:$0x7] }
  0x87   : > { %1628 = vmatprep.subr.mxu0 %v266_v54  ;;  %1699 = vmatprep.subr.mxu1 %v268_v55  ;;  %v397_v54 = vld [vmem:[%s5601_s5 + $0x4e0] sm:$0x7]  ;;  %v399_v55 = vld [vmem:[%s5601_s5 + $0x4f0] sm:$0x7] }
  0x88   : > { %1629 = vmatpush1.msra.mxu0 %v265_v56  ;;  %1662 = vmatprep.mubr.f32.mxu0 %v5408_v0  ;;  %v298_v56 = vld [vmem:[%s5601_s5 + $0x1c8] sm:$0xff] }
  0x89   : > { %1700 = vmatpush1.msra.mxu1 %v267_v57  ;;  %1733 = vmatprep.mubr.f32.mxu1 %v5408_v0  ;;  %v300_v57 = vld [vmem:[%s5601_s5 + $0x1d8] sm:$0xff] }
  0x8a   : > { %5061 = vmatmul.mubr.msk.f32.vlgmr.msra.gmra.mxu0 %vm441_vm1, %v5621_v9  ;;  %5064 = vmatmul.mubr.msk.f32.vlgmr.msra.gmra.mxu1 %vm441_vm1, %v5621_v9 }
  0x8b   : > { %5065 = vmatprep.subr.msk.mxu0 %vm445_vm0, %v370_v58  ;;  %5068 = vmatprep.subr.msk.mxu1 %vm445_vm0, %v372_v59  ;;  %v297_v58 = vld [vmem:[%s5601_s5 + $0x1c0] sm:$0xff]  ;;  %v299_v59 = vld [vmem:[%s5601_s5 + $0x1d0] sm:$0xff] }
  0x8c   : > { %5066 = vmatpush1.msk.msra.mxu0 %vm445_vm0, %v369_v60  ;;  %5069 = vmatpush1.msk.msra.mxu1 %vm445_vm0, %v371_v61  ;;  %v402_v60 = vld [vmem:[%s5601_s5 + $0x508] sm:$0x7]  ;;  %v404_v61 = vld [vmem:[%s5601_s5 + $0x518] sm:$0x7] }
  0x8d   : > { %1770 = vmatprep.subr.mxu0 %v270_v62  ;;  %1841 = vmatprep.subr.mxu1 %v272_v63  ;;  %v401_v62 = vld [vmem:[%s5601_s5 + $0x500] sm:$0x7]  ;;  %v403_v63 = vld [vmem:[%s5601_s5 + $0x510] sm:$0x7] }
  0x8e   : > { %1771 = vmatpush1.msra.mxu0 %v269_v1  ;;  %1804 = vmatprep.mubr.f32.mxu0 %v5408_v0  ;;  %v302_v1 = vld [vmem:[%s5601_s5 + $0x1e8] sm:$0xff] }
  0x8f   : > { %1842 = vmatpush1.msra.mxu1 %v271_v2  ;;  %1875 = vmatprep.mubr.f32.mxu1 %v5408_v0  ;;  %v304_v2 = vld [vmem:[%s5601_s5 + $0x1f8] sm:$0xff] }
  0x90   : > { %5067 = vmatmul.mubr.msk.f32.vlgmr.msra.gmra.mxu0 %vm441_vm1, %v5621_v9  ;;  %5070 = vmatmul.mubr.msk.f32.vlgmr.msra.gmra.mxu1 %vm441_vm1, %v5621_v9 }
  0x91   : > { %5071 = vmatprep.subr.msk.mxu0 %vm445_vm0, %v374_v3  ;;  %5074 = vmatprep.subr.msk.mxu1 %vm445_vm0, %v376_v4  ;;  %v301_v3 = vld [vmem:[%s5601_s5 + $0x1e0] sm:$0xff]  ;;  %v303_v4 = vld [vmem:[%s5601_s5 + $0x1f0] sm:$0xff] }
  0x92   : > { %5072 = vmatpush1.msk.msra.mxu0 %vm445_vm0, %v373_v5  ;;  %5075 = vmatpush1.msk.msra.mxu1 %vm445_vm0, %v375_v6  ;;  %v406_v5 = vld [vmem:[%s5601_s5 + $0x528] sm:$0x7]  ;;  %v408_v6 = vld [vmem:[%s5601_s5 + $0x538] sm:$0x7] }
  0x93   : > { %1912 = vmatprep.subr.mxu0 %v274_v7  ;;  %1983 = vmatprep.subr.mxu1 %v276_v8  ;;  %v405_v7 = vld [vmem:[%s5601_s5 + $0x520] sm:$0x7]  ;;  %v407_v8 = vld [vmem:[%s5601_s5 + $0x530] sm:$0x7] }
  0x94   : > { %1913 = vmatpush1.msra.mxu0 %v273_v10  ;;  %1946 = vmatprep.mubr.f32.mxu0 %v5408_v0  ;;  %v306_v10 = vld [vmem:[%s5601_s5 + $0x208] sm:$0xff] }
  0x95   : > { %1984 = vmatpush1.msra.mxu1 %v275_v11  ;;  %2017 = vmatprep.mubr.f32.mxu1 %v5408_v0  ;;  %v308_v11 = vld [vmem:[%s5601_s5 + $0x218] sm:$0xff] }
  0x96   : > { %5073 = vmatmul.mubr.msk.f32.vlgmr.msra.gmra.mxu0 %vm441_vm1, %v5621_v9  ;;  %5076 = vmatmul.mubr.msk.f32.vlgmr.msra.gmra.mxu1 %vm441_vm1, %v5621_v9 }
  0x97   : > { %5077 = vmatprep.subr.msk.mxu0 %vm445_vm0, %v378_v12  ;;  %5080 = vmatprep.subr.msk.mxu1 %vm445_vm0, %v380_v13  ;;  %v305_v12 = vld [vmem:[%s5601_s5 + $0x200] sm:$0xff]  ;;  %v307_v13 = vld [vmem:[%s5601_s5 + $0x210] sm:$0xff] }
  0x98   : > { %5078 = vmatpush1.msk.msra.mxu0 %vm445_vm0, %v377_v14  ;;  %5081 = vmatpush1.msk.msra.mxu1 %vm445_vm0, %v379_v15  ;;  %v410_v14 = vld [vmem:[%s5601_s5 + $0x548] sm:$0x7]  ;;  %v412_v15 = vld [vmem:[%s5601_s5 + $0x558] sm:$0x7] }
  0x99   : > { %2054 = vmatprep.subr.mxu0 %v278_v16  ;;  %2125 = vmatprep.subr.mxu1 %v280_v17  ;;  %v409_v16 = vld [vmem:[%s5601_s5 + $0x540] sm:$0x7]  ;;  %v411_v17 = vld [vmem:[%s5601_s5 + $0x550] sm:$0x7] }
  0x9a   : > { %2055 = vmatpush1.msra.mxu0 %v277_v18  ;;  %2088 = vmatprep.mubr.f32.mxu0 %v5408_v0  ;;  %v310_v18 = vld [vmem:[%s5601_s5 + $0x228] sm:$0xff] }
  0x9b   : > { %2126 = vmatpush1.msra.mxu1 %v279_v19  ;;  %2159 = vmatprep.mubr.f32.mxu1 %v5408_v0  ;;  %v312_v19 = vld [vmem:[%s5601_s5 + $0x238] sm:$0xff] }
  0x9c   : > { %5079 = vmatmul.mubr.msk.f32.vlgmr.msra.gmra.mxu0 %vm441_vm1, %v5621_v9  ;;  %5082 = vmatmul.mubr.msk.f32.vlgmr.msra.gmra.mxu1 %vm441_vm1, %v5621_v9 }
  0x9d   : > { %5083 = vmatprep.subr.msk.mxu0 %vm445_vm0, %v382_v20  ;;  %5086 = vmatprep.subr.msk.mxu1 %vm445_vm0, %v384_v21  ;;  %v309_v20 = vld [vmem:[%s5601_s5 + $0x220] sm:$0xff]  ;;  %v311_v21 = vld [vmem:[%s5601_s5 + $0x230] sm:$0xff] }
  0x9e   : > { %5084 = vmatpush1.msk.msra.mxu0 %vm445_vm0, %v381_v22  ;;  %5087 = vmatpush1.msk.msra.mxu1 %vm445_vm0, %v383_v23  ;;  %v414_v22 = vld [vmem:[%s5601_s5 + $0x568] sm:$0x7]  ;;  %v416_v23 = vld [vmem:[%s5601_s5 + $0x578] sm:$0x7] }
  0x9f   : > { %2196 = vmatprep.subr.mxu0 %v282_v24  ;;  %2267 = vmatprep.subr.mxu1 %v284_v25  ;;  %v413_v24 = vld [vmem:[%s5601_s5 + $0x560] sm:$0x7]  ;;  %v415_v25 = vld [vmem:[%s5601_s5 + $0x570] sm:$0x7] }
  0xa0   : > { %2197 = vmatpush1.msra.mxu0 %v281_v26  ;;  %2230 = vmatprep.mubr.f32.mxu0 %v5408_v0  ;;  %v314_v26 = vld [vmem:[%s5601_s5 + $0x248] sm:$0xff] }
  0xa1   : > { %2268 = vmatpush1.msra.mxu1 %v283_v27  ;;  %2301 = vmatprep.mubr.f32.mxu1 %v5408_v0  ;;  %v316_v27 = vld [vmem:[%s5601_s5 + $0x258] sm:$0xff] }
  0xa2   : > { %5085 = vmatmul.mubr.msk.f32.vlgmr.msra.gmra.mxu0 %vm441_vm1, %v5621_v9  ;;  %5088 = vmatmul.mubr.msk.f32.vlgmr.msra.gmra.mxu1 %vm441_vm1, %v5621_v9 }
  0xa3   : > { %5089 = vmatprep.subr.msk.mxu0 %vm445_vm0, %v386_v28  ;;  %5092 = vmatprep.subr.msk.mxu1 %vm445_vm0, %v388_v29  ;;  %v313_v28 = vld [vmem:[%s5601_s5 + $0x240] sm:$0xff]  ;;  %v315_v29 = vld [vmem:[%s5601_s5 + $0x250] sm:$0xff] }
  0xa4   : > { %5090 = vmatpush1.msk.msra.mxu0 %vm445_vm0, %v385_v30  ;;  %5093 = vmatpush1.msk.msra.mxu1 %vm445_vm0, %v387_v31  ;;  %v418_v30 = vld [vmem:[%s5601_s5 + $0x588] sm:$0x7]  ;;  %v420_v31 = vld [vmem:[%s5601_s5 + $0x598] sm:$0x7] }
  0xa5   : > { %2338 = vmatprep.subr.mxu0 %v286_v32  ;;  %2409 = vmatprep.subr.mxu1 %v288_v33  ;;  %v417_v32 = vld [vmem:[%s5601_s5 + $0x580] sm:$0x7]  ;;  %v419_v33 = vld [vmem:[%s5601_s5 + $0x590] sm:$0x7] }
  0xa6   : > { %2339 = vmatpush1.msra.mxu0 %v285_v34  ;;  %2372 = vmatprep.mubr.f32.mxu0 %v5408_v0  ;;  %v318_v34 = vld [vmem:[%s5601_s5 + $0x268] sm:$0xff] }
  0xa7   : > { %2410 = vmatpush1.msra.mxu1 %v287_v35  ;;  %2443 = vmatprep.mubr.f32.mxu1 %v5408_v0  ;;  %v320_v35 = vld [vmem:[%s5601_s5 + $0x278] sm:$0xff] }
  0xa8   : > { %5091 = vmatmul.mubr.msk.f32.vlgmr.msra.gmra.mxu0 %vm441_vm1, %v5621_v9  ;;  %5094 = vmatmul.mubr.msk.f32.vlgmr.msra.gmra.mxu1 %vm441_vm1, %v5621_v9 }
  0xa9   : > { %5095 = vmatprep.subr.msk.mxu0 %vm445_vm0, %v390_v36  ;;  %5098 = vmatprep.subr.msk.mxu1 %vm445_vm0, %v392_v37  ;;  %v317_v36 = vld [vmem:[%s5601_s5 + $0x260] sm:$0xff]  ;;  %v319_v37 = vld [vmem:[%s5601_s5 + $0x270] sm:$0xff] }
  0xaa   : > { %5096 = vmatpush1.msk.msra.mxu0 %vm445_vm0, %v389_v38  ;;  %5099 = vmatpush1.msk.msra.mxu1 %vm445_vm0, %v391_v39  ;;  %v422_v38 = vld [vmem:[%s5601_s5 + $0x5a8] sm:$0x7]  ;;  %v424_v39 = vld [vmem:[%s5601_s5 + $0x5b8] sm:$0x7] }
  0xab   : > { %2480 = vmatprep.subr.mxu0 %v290_v40  ;;  %2551 = vmatprep.subr.mxu1 %v292_v41  ;;  %v421_v40 = vld [vmem:[%s5601_s5 + $0x5a0] sm:$0x7]  ;;  %v423_v41 = vld [vmem:[%s5601_s5 + $0x5b0] sm:$0x7] }
  0xac   : > { %2481 = vmatpush1.msra.mxu0 %v289_v42  ;;  %2514 = vmatprep.mubr.f32.mxu0 %v5408_v0  ;;  %v322_v42 = vld [vmem:[%s5601_s5 + $0x288] sm:$0xff] }
  0xad   : > { %2552 = vmatpush1.msra.mxu1 %v291_v43  ;;  %2585 = vmatprep.mubr.f32.mxu1 %v5408_v0  ;;  %v324_v43 = vld [vmem:[%s5601_s5 + $0x298] sm:$0xff] }
  0xae   : > { %5097 = vmatmul.mubr.msk.f32.vlgmr.msra.gmra.mxu0 %vm441_vm1, %v5621_v9  ;;  %5100 = vmatmul.mubr.msk.f32.vlgmr.msra.gmra.mxu1 %vm441_vm1, %v5621_v9 }
  0xaf   : > { %5101 = vmatprep.subr.msk.mxu0 %vm445_vm0, %v394_v44  ;;  %5104 = vmatprep.subr.msk.mxu1 %vm445_vm0, %v396_v45  ;;  %v321_v44 = vld [vmem:[%s5601_s5 + $0x280] sm:$0xff]  ;;  %v323_v45 = vld [vmem:[%s5601_s5 + $0x290] sm:$0xff] }
  0xb0   : > { %5102 = vmatpush1.msk.msra.mxu0 %vm445_vm0, %v393_v46  ;;  %5105 = vmatpush1.msk.msra.mxu1 %vm445_vm0, %v395_v47  ;;  %v426_v46 = vld [vmem:[%s5601_s5 + $0x5c8] sm:$0x7]  ;;  %v428_v47 = vld [vmem:[%s5601_s5 + $0x5d8] sm:$0x7] }
  0xb1   : > { %2622 = vmatprep.subr.mxu0 %v294_v48  ;;  %2693 = vmatprep.subr.mxu1 %v296_v49  ;;  %v425_v48 = vld [vmem:[%s5601_s5 + $0x5c0] sm:$0x7]  ;;  %v427_v49 = vld [vmem:[%s5601_s5 + $0x5d0] sm:$0x7] }
  0xb2   : > { %2623 = vmatpush1.msra.mxu0 %v293_v50  ;;  %2656 = vmatprep.mubr.f32.mxu0 %v5408_v0  ;;  %v326_v50 = vld [vmem:[%s5601_s5 + $0x2a8] sm:$0xff] }
  0xb3   : > { %2694 = vmatpush1.msra.mxu1 %v295_v51  ;;  %2727 = vmatprep.mubr.f32.mxu1 %v5408_v0  ;;  %v328_v51 = vld [vmem:[%s5601_s5 + $0x2b8] sm:$0xff] }
  0xb4   : > { %5103 = vmatmul.mubr.msk.f32.vlgmr.msra.gmra.mxu0 %vm441_vm1, %v5621_v9  ;;  %5106 = vmatmul.mubr.msk.f32.vlgmr.msra.gmra.mxu1 %vm441_vm1, %v5621_v9 }
  0xb5   : > { %5107 = vmatprep.subr.msk.mxu0 %vm445_vm0, %v398_v52  ;;  %5110 = vmatprep.subr.msk.mxu1 %vm445_vm0, %v400_v53  ;;  %v325_v52 = vld [vmem:[%s5601_s5 + $0x2a0] sm:$0xff]  ;;  %v327_v53 = vld [vmem:[%s5601_s5 + $0x2b0] sm:$0xff] }
  0xb6   : > { %5108 = vmatpush1.msk.msra.mxu0 %vm445_vm0, %v397_v54  ;;  %5111 = vmatpush1.msk.msra.mxu1 %vm445_vm0, %v399_v55  ;;  %v430_v54 = vld [vmem:[%s5601_s5 + $0x5e8] sm:$0x7]  ;;  %v432_v55 = vld [vmem:[%s5601_s5 + $0x5f8] sm:$0x7] }
  0xb7   : > { %2764 = vmatprep.subr.mxu0 %v298_v56  ;;  %2835 = vmatprep.subr.mxu1 %v300_v57  ;;  %v429_v56 = vld [vmem:[%s5601_s5 + $0x5e0] sm:$0x7]  ;;  %v431_v57 = vld [vmem:[%s5601_s5 + $0x5f0] sm:$0x7] }
  0xb8   : > { %2765 = vmatpush1.msra.mxu0 %v297_v58  ;;  %2798 = vmatprep.mubr.f32.mxu0 %v5408_v0  ;;  %v330_v58 = vld [vmem:[%s5601_s5 + $0x2c8] sm:$0xff] }
  0xb9   : > { %2836 = vmatpush1.msra.mxu1 %v299_v59  ;;  %2869 = vmatprep.mubr.f32.mxu1 %v5408_v0  ;;  %v332_v59 = vld [vmem:[%s5601_s5 + $0x2d8] sm:$0xff] }
  0xba   : > { %5109 = vmatmul.mubr.msk.f32.vlgmr.msra.gmra.mxu0 %vm441_vm1, %v5621_v9  ;;  %5112 = vmatmul.mubr.msk.f32.vlgmr.msra.gmra.mxu1 %vm441_vm1, %v5621_v9 }
  0xbb   : > { %5113 = vmatprep.subr.msk.mxu0 %vm445_vm0, %v402_v60  ;;  %5116 = vmatprep.subr.msk.mxu1 %vm445_vm0, %v404_v61  ;;  %v329_v60 = vld [vmem:[%s5601_s5 + $0x2c0] sm:$0xff]  ;;  %v331_v61 = vld [vmem:[%s5601_s5 + $0x2d0] sm:$0xff] }
  0xbc   : > { %5114 = vmatpush1.msk.msra.mxu0 %vm445_vm0, %v401_v62  ;;  %5117 = vmatpush1.msk.msra.mxu1 %vm445_vm0, %v403_v63  ;;  %v434_v62 = vld [vmem:[%s5601_s5 + $0x608] sm:$0x7]  ;;  %v436_v63 = vld [vmem:[%s5601_s5 + $0x618] sm:$0x7] }
  0xbd   : > { %2906 = vmatprep.subr.mxu0 %v302_v1  ;;  %2977 = vmatprep.subr.mxu1 %v304_v2  ;;  %v433_v1 = vld [vmem:[%s5601_s5 + $0x600] sm:$0x7]  ;;  %v435_v2 = vld [vmem:[%s5601_s5 + $0x610] sm:$0x7] }
  0xbe   : > { %2907 = vmatpush1.msra.mxu0 %v301_v3  ;;  %2940 = vmatprep.mubr.f32.mxu0 %v5408_v0  ;;  %v334_v3 = vld [vmem:[%s5601_s5 + $0x2e8] sm:$0xff] }
  0xbf   : > { %2978 = vmatpush1.msra.mxu1 %v303_v4  ;;  %3011 = vmatprep.mubr.f32.mxu1 %v5408_v0  ;;  %v336_v4 = vld [vmem:[%s5601_s5 + $0x2f8] sm:$0xff] }
  0xc0   : > { %5115 = vmatmul.mubr.msk.f32.vlgmr.msra.gmra.mxu0 %vm441_vm1, %v5621_v9  ;;  %5118 = vmatmul.mubr.msk.f32.vlgmr.msra.gmra.mxu1 %vm441_vm1, %v5621_v9 }
  0xc1   : > { %5119 = vmatprep.subr.msk.mxu0 %vm445_vm0, %v406_v5  ;;  %5122 = vmatprep.subr.msk.mxu1 %vm445_vm0, %v408_v6  ;;  %v333_v5 = vld [vmem:[%s5601_s5 + $0x2e0] sm:$0xff]  ;;  %v335_v6 = vld [vmem:[%s5601_s5 + $0x2f0] sm:$0xff] }
  0xc2   : > { %5120 = vmatpush1.msk.msra.mxu0 %vm445_vm0, %v405_v7  ;;  %5123 = vmatpush1.msk.msra.mxu1 %vm445_vm0, %v407_v8  ;;  %v438_v7 = vld [vmem:[%s5601_s5 + $0x628] sm:$0x7]  ;;  %v440_v8 = vld [vmem:[%s5601_s5 + $0x638] sm:$0x7] }
  0xc3   : > { %3048 = vmatprep.subr.mxu0 %v306_v10  ;;  %3119 = vmatprep.subr.mxu1 %v308_v11  ;;  %v437_v10 = vld [vmem:[%s5601_s5 + $0x620] sm:$0x7]  ;;  %v439_v11 = vld [vmem:[%s5601_s5 + $0x630] sm:$0x7] }
  0xc4   : > { %3049 = vmatpush1.msra.mxu0 %v305_v12  ;;  %3082 = vmatprep.mubr.f32.mxu0 %v5408_v0  ;;  %v338_v12 = vld [vmem:[%s5601_s5 + $0x308] sm:$0xff] }
  0xc5   : > { %3120 = vmatpush1.msra.mxu1 %v307_v13  ;;  %3153 = vmatprep.mubr.f32.mxu1 %v5408_v0  ;;  %v340_v13 = vld [vmem:[%s5601_s5 + $0x318] sm:$0xff] }
  0xc6   : > { %5121 = vmatmul.mubr.msk.f32.vlgmr.msra.gmra.mxu0 %vm441_vm1, %v5621_v9  ;;  %5124 = vmatmul.mubr.msk.f32.vlgmr.msra.gmra.mxu1 %vm441_vm1, %v5621_v9 }
  0xc7   : > { %5125 = vmatprep.subr.msk.mxu0 %vm445_vm0, %v410_v14  ;;  %5128 = vmatprep.subr.msk.mxu1 %vm445_vm0, %v412_v15  ;;  %v337_v14 = vld [vmem:[%s5601_s5 + $0x300] sm:$0xff]  ;;  %v339_v15 = vld [vmem:[%s5601_s5 + $0x310] sm:$0xff] }
  0xc8   : > { %5126 = vmatpush1.msk.msra.mxu0 %vm445_vm0, %v409_v16  ;;  %5129 = vmatpush1.msk.msra.mxu1 %vm445_vm0, %v411_v17 }
  0xc9   : > { %3190 = vmatprep.subr.mxu0 %v310_v18  ;;  %3261 = vmatprep.subr.mxu1 %v312_v19 }
  0xca   : > { %3191 = vmatpush1.msra.mxu0 %v309_v20  ;;  %3224 = vmatprep.mubr.f32.mxu0 %v5408_v0 }
  0xcb   : > { %3262 = vmatpush1.msra.mxu1 %v311_v21  ;;  %3295 = vmatprep.mubr.f32.mxu1 %v5408_v0 }
  0xcc   : > { %5127 = vmatmul.mubr.msk.f32.vlgmr.msra.gmra.mxu0 %vm441_vm1, %v5621_v9  ;;  %5130 = vmatmul.mubr.msk.f32.vlgmr.msra.gmra.mxu1 %vm441_vm1, %v5621_v9 }
  0xcd   : > { %5131 = vmatprep.subr.msk.mxu0 %vm445_vm0, %v414_v22  ;;  %5134 = vmatprep.subr.msk.mxu1 %vm445_vm0, %v416_v23 }
  0xce   : > { %5132 = vmatpush1.msk.msra.mxu0 %vm445_vm0, %v413_v24  ;;  %5135 = vmatpush1.msk.msra.mxu1 %vm445_vm0, %v415_v25 }
  0xcf   : > { %3332 = vmatprep.subr.mxu0 %v314_v26  ;;  %3403 = vmatprep.subr.mxu1 %v316_v27 }
  0xd0   : > { %3333 = vmatpush1.msra.mxu0 %v313_v28  ;;  %3366 = vmatprep.mubr.f32.mxu0 %v5408_v0 }
  0xd1   : > { %3404 = vmatpush1.msra.mxu1 %v315_v29  ;;  %3437 = vmatprep.mubr.f32.mxu1 %v5408_v0 }
  0xd2   : > { %5133 = vmatmul.mubr.msk.f32.vlgmr.msra.gmra.mxu0 %vm441_vm1, %v5621_v9  ;;  %5136 = vmatmul.mubr.msk.f32.vlgmr.msra.gmra.mxu1 %vm441_vm1, %v5621_v9 }
  0xd3   : > { %5137 = vmatprep.subr.msk.mxu0 %vm445_vm0, %v418_v30  ;;  %5140 = vmatprep.subr.msk.mxu1 %vm445_vm0, %v420_v31 }
  0xd4   : > { %5138 = vmatpush1.msk.msra.mxu0 %vm445_vm0, %v417_v32  ;;  %5141 = vmatpush1.msk.msra.mxu1 %vm445_vm0, %v419_v33 }
  0xd5   : > { %3474 = vmatprep.subr.mxu0 %v318_v34  ;;  %3545 = vmatprep.subr.mxu1 %v320_v35 }
  0xd6   : > { %3475 = vmatpush1.msra.mxu0 %v317_v36  ;;  %3508 = vmatprep.mubr.f32.mxu0 %v5408_v0 }
  0xd7   : > { %3546 = vmatpush1.msra.mxu1 %v319_v37  ;;  %3579 = vmatprep.mubr.f32.mxu1 %v5408_v0 }
  0xd8   : > { %5139 = vmatmul.mubr.msk.f32.vlgmr.msra.gmra.mxu0 %vm441_vm1, %v5621_v9  ;;  %5142 = vmatmul.mubr.msk.f32.vlgmr.msra.gmra.mxu1 %vm441_vm1, %v5621_v9 }
  0xd9   : > { %5143 = vmatprep.subr.msk.mxu0 %vm445_vm0, %v422_v38  ;;  %5146 = vmatprep.subr.msk.mxu1 %vm445_vm0, %v424_v39 }
  0xda   : > { %5144 = vmatpush1.msk.msra.mxu0 %vm445_vm0, %v421_v40  ;;  %5147 = vmatpush1.msk.msra.mxu1 %vm445_vm0, %v423_v41 }
  0xdb   : > { %3616 = vmatprep.subr.mxu0 %v322_v42  ;;  %3687 = vmatprep.subr.mxu1 %v324_v43 }
  0xdc   : > { %3617 = vmatpush1.msra.mxu0 %v321_v44  ;;  %3650 = vmatprep.mubr.f32.mxu0 %v5408_v0  ;;  %v5409_v44 = vmov 1983009808  }
  0xdd   : > { %3688 = vmatpush1.msra.mxu1 %v323_v45  ;;  %3721 = vmatprep.mubr.f32.mxu1 %v5408_v0  ;;  %v4362_v45 = vunpack.c.l.s4 %v5409_v44 }
  0xde   : > { %5145 = vmatmul.mubr.msk.f32.vlgmr.msra.gmra.mxu0 %vm441_vm1, %v5621_v9  ;;  %5148 = vmatmul.mubr.msk.f32.vlgmr.msra.gmra.mxu1 %vm441_vm1, %v5621_v9 }
  0xdf   : > { %5149 = vmatprep.subr.msk.mxu0 %vm445_vm0, %v426_v46  ;;  %5152 = vmatprep.subr.msk.mxu1 %vm445_vm0, %v428_v47  ;;  %v4364_v46 = vlaneseq }
  0xe0   : > { %5150 = vmatpush1.msk.msra.mxu0 %vm445_vm0, %v425_v48  ;;  %5153 = vmatpush1.msk.msra.mxu1 %vm445_vm0, %v427_v49 }
  0xe1   : > { %3758 = vmatprep.subr.mxu0 %v326_v50  ;;  %3829 = vmatprep.subr.mxu1 %v328_v51  ;;  %v4363_v50 = vunpack.c.0.s8 %v4362_v45  ;;  %v4365_v51 = vshrl.u32 %v4364_v46, 7 }
  0xe2   : > { %3759 = vmatpush1.msra.mxu0 %v325_v52  ;;  %3792 = vmatprep.mubr.f32.mxu0 %v5408_v0 }
  0xe3   : > { %3830 = vmatpush1.msra.mxu1 %v327_v53  ;;  %3863 = vmatprep.mubr.f32.mxu1 %v5408_v0 }
  0xe4   : > { %5151 = vmatmul.mubr.msk.f32.vlgmr.msra.gmra.mxu0 %vm441_vm1, %v5621_v9  ;;  %5154 = vmatmul.mubr.msk.f32.vlgmr.msra.gmra.mxu1 %vm441_vm1, %v5621_v9 }
  0xe5   : > { %5155 = vmatprep.subr.msk.mxu0 %vm445_vm0, %v430_v54  ;;  %5158 = vmatprep.subr.msk.mxu1 %vm445_vm0, %v432_v55 }
  0xe6   : > { %5156 = vmatpush1.msk.msra.mxu0 %vm445_vm0, %v429_v56  ;;  %5159 = vmatpush1.msk.msra.mxu1 %vm445_vm0, %v431_v57  ;;  %v6125_v56 = vsub.s32 %v4363_v50, %v4365_v51 }
  0xe7   : > { %3900 = vmatprep.subr.mxu0 %v330_v58  ;;  %3971 = vmatprep.subr.mxu1 %v332_v59 }
  0xe8   : > { %3901 = vmatpush1.msra.mxu0 %v329_v60  ;;  %3934 = vmatprep.mubr.f32.mxu0 %v5408_v0 }
  0xe9   : > { %3972 = vmatpush1.msra.mxu1 %v331_v61  ;;  %4005 = vmatprep.mubr.f32.mxu1 %v5408_v0 }
  0xea   : > { %5157 = vmatmul.mubr.msk.f32.vlgmr.msra.gmra.mxu0 %vm441_vm1, %v5621_v9  ;;  %5160 = vmatmul.mubr.msk.f32.vlgmr.msra.gmra.mxu1 %vm441_vm1, %v5621_v9 }
  0xeb   : > { %5161 = vmatprep.subr.msk.mxu0 %vm445_vm0, %v434_v62  ;;  %5164 = vmatprep.subr.msk.mxu1 %vm445_vm0, %v436_v63 }
  0xec   : > { %5162 = vmatpush1.msk.msra.mxu0 %vm445_vm0, %v433_v1  ;;  %5165 = vmatpush1.msk.msra.mxu1 %vm445_vm0, %v435_v2 }
  0xed   : > { %4042 = vmatprep.subr.mxu0 %v334_v3  ;;  %4113 = vmatprep.subr.mxu1 %v336_v4 }
  0xee   : > { %4043 = vmatpush1.msra.mxu0 %v333_v5  ;;  %4076 = vmatprep.mubr.f32.mxu0 %v5408_v0 }
  0xef   : > { %4114 = vmatpush1.msra.mxu1 %v335_v6  ;;  %4147 = vmatprep.mubr.f32.mxu1 %v5408_v0 }
  0xf0   : > { %5163 = vmatmul.mubr.msk.f32.vlgmr.msra.gmra.mxu0 %vm441_vm1, %v5621_v9  ;;  %5166 = vmatmul.mubr.msk.f32.vlgmr.msra.gmra.mxu1 %vm441_vm1, %v5621_v9 }
  0xf1   : > { %5167 = vmatprep.subr.msk.mxu0 %vm445_vm0, %v438_v7  ;;  %5170 = vmatprep.subr.msk.mxu1 %vm445_vm0, %v440_v8 }
  0xf2   : > { %5168 = vmatpush1.msk.msra.mxu0 %vm445_vm0, %v437_v10  ;;  %5171 = vmatpush1.msk.msra.mxu1 %vm445_vm0, %v439_v11 }
  0xf3   : > { %4184 = vmatprep.subr.mxu0 %v338_v12  ;;  %4255 = vmatprep.subr.mxu1 %v340_v13 }
  0xf4   : > { %4185 = vmatpush1.msra.mxu0 %v337_v14  ;;  %4218 = vmatprep.mubr.f32.mxu0 %v5408_v0 }
  0xf5   : > { %4256 = vmatpush1.msra.mxu1 %v339_v15  ;;  %4289 = vmatprep.mubr.f32.mxu1 %v5408_v0 }
  0xf6   : > { %5169 = vmatmul.mubr.msk.f32.vlgmr.msra.gmra.mxu0 %vm441_vm1, %v5621_v9  ;;  %5172 = vmatmul.mubr.msk.f32.vlgmr.msra.gmra.mxu1 %vm441_vm1, %v5621_v9 }
 0x126   : > { %v6059_v16 = vpop.f32.mrf.mxu0  ;;  %v6061_v17 = vpop.f32.mrf.mxu1 }
 0x128   : > { %v6063_v18 = vpop.f32.mrf.mxu0  ;;  %v6065_v19 = vpop.f32.mrf.mxu1 }
 0x12c   : > { %v6067_v20 = vpop.f32.mrf.mxu0  ;;  %v6069_v21 = vpop.f32.mrf.mxu1 }
 0x12e   : > { %v6071_v22 = vpop.f32.mrf.mxu0  ;;  %v6073_v0 = vpop.f32.mrf.mxu1 }
 0x132   : > { %v6075_v23 = vpop.f32.mrf.mxu0  ;;  %v6077_v24 = vpop.f32.mrf.mxu1 }
 0x134   : > { %v6079_v9 = vpop.f32.mrf.mxu0  ;;  %v6081_v25 = vpop.f32.mrf.mxu1 }
 0x138   : > { %v6083_v26 = vpop.f32.mrf.mxu0  ;;  %v6085_v27 = vpop.f32.mrf.mxu1 }
 0x13a   : > { %v6087_v28 = vpop.f32.mrf.mxu0  ;;  %v6089_v29 = vpop.f32.mrf.mxu1 }
 0x13e   : > { %v6091_v30 = vpop.f32.mrf.mxu0  ;;  %v6093_v31 = vpop.f32.mrf.mxu1 }
 0x140   : > { %v6095_v32 = vpop.f32.mrf.mxu0  ;;  %v6097_v33 = vpop.f32.mrf.mxu1 }
 0x144   : > { %v6099_v34 = vpop.f32.mrf.mxu0  ;;  %v6101_v35 = vpop.f32.mrf.mxu1 }
 0x146   : > { %v6103_v36 = vpop.f32.mrf.mxu0  ;;  %v6105_v37 = vpop.f32.mrf.mxu1 }
 0x14a   : > { %v6107_v38 = vpop.f32.mrf.mxu0  ;;  %v6109_v39 = vpop.f32.mrf.mxu1 }
 0x14c   : > { %v6111_v40 = vpop.f32.mrf.mxu0  ;;  %v6113_v41 = vpop.f32.mrf.mxu1 }
 0x150   : > { %v6115_v42 = vpop.f32.mrf.mxu0  ;;  %v6117_v43 = vpop.f32.mrf.mxu1 }
 0x152   : > { %v6119_v47 = vpop.f32.mrf.mxu0  ;;  %v6121_v48 = vpop.f32.mrf.mxu1 }
 0x153   : > { %v4478_v49 = vcombine.low %v6115_v42, %v6119_v47 }
 0x156   : > { %v1948_v52 = vpop.f32.mrf.mxu0  ;;  %v2019_v53 = vpop.f32.mrf.mxu1 }
 0x158   : > { %v1950_v54 = vpop.f32.mrf.mxu0  ;;  %v2021_v55 = vpop.f32.mrf.mxu1 }
 0x159   : > { %v4495_v57 = vcombine.low %v1948_v52, %v1950_v54  ;;  %v4496_v58 = vcombine.low %v2019_v53, %v2021_v55 }
 0x15b   : > { %v6128_v59 = vrot.slane %v4495_v57, %v6125_v56  ;;  %v6131_v60 = vrot.slane %v4496_v58, %v6125_v56  ;;  %v4359_v58 = vcombine.low %v6059_v16, %v6063_v18 }
 0x15c   : > { %v2090_v61 = vpop.f32.mrf.mxu0  ;;  %v2161_v62 = vpop.f32.mrf.mxu1 }
 0x15d   : > { %v4511_v63 = vcombine.low %v6128_v59, %v6131_v60 }
 0x15e   : > { %v2092_v1 = vpop.f32.mrf.mxu0  ;;  %v2163_v2 = vpop.f32.mrf.mxu1 }
 0x15f   : > { %v4512_v3 = vcombine.low %v2090_v61, %v2092_v1  ;;  %v4513_v4 = vcombine.low %v2161_v62, %v2163_v2  ;;  %v4360_v61 = vcombine.low %v6061_v17, %v6065_v19  ;;  %v4376_v19 = vcombine.low %v6067_v20, %v6071_v22 }
 0x161   : > { %v6136_v5 = vrot.slane %v4512_v3, %v6125_v56  ;;  %v6139_v6 = vrot.slane %v4513_v4, %v6125_v56  ;;  %v4374_v16 = vrot.slane %v4360_v61, %v6125_v56  ;;  %v4394_v61 = vcombine.low %v6077_v24, %v6081_v25 }
 0x162   : > { %v2232_v7 = vpop.f32.mrf.mxu0  ;;  %v2303_v8 = vpop.f32.mrf.mxu1  ;;  %v4411_v25 = vcombine.low %v6085_v27, %v6089_v29  ;;  %v4428_v29 = vcombine.low %v6093_v31, %v6097_v33 }
 0x163   : > { %v4528_v10 = vcombine.low %v6136_v5, %v6139_v6 }
 0x164   : > { %v2234_v11 = vpop.f32.mrf.mxu0  ;;  %v2305_v12 = vpop.f32.mrf.mxu1 }
 0x165   : > { %v4529_v13 = vcombine.low %v2232_v7, %v2234_v11  ;;  %v4530_v14 = vcombine.low %v2303_v8, %v2305_v12  ;;  %v4367_v8 = vrot.slane %v4359_v58, %v6125_v56  ;;  %v4377_v11 = vcombine.low %v6069_v21, %v6073_v0 }
 0x166   : > { %v4393_v58 = vcombine.low %v6075_v23, %v6079_v9  ;;  %v4410_v9 = vcombine.low %v6083_v26, %v6087_v28  ;;  %v4427_v28 = vcombine.low %v6091_v30, %v6095_v32 }
 0x167   : > { %v6144_v15 = vrot.slane %v4529_v13, %v6125_v56  ;;  %v6147_v44 = vrot.slane %v4530_v14, %v6125_v56  ;;  %v4375_v13 = vcombine.low %v4367_v8, %v4374_v16 }
 0x168   : > { %v2374_v45 = vpop.f32.mrf.mxu0  ;;  %v2445_v46 = vpop.f32.mrf.mxu1 }
 0x169   : > { %v4545_v50 = vcombine.low %v6144_v15, %v6147_v44 }
 0x16a   : > { %v2376_v51 = vpop.f32.mrf.mxu0  ;;  %v2447_v52 = vpop.f32.mrf.mxu1 }
 0x16b   : > { %v4546_v53 = vcombine.low %v2374_v45, %v2376_v51  ;;  %v4547_v54 = vcombine.low %v2445_v46, %v2447_v52  ;;  %v4296_v46 = vld [vmem:[%s6178_s28] sm:$0xff]  ;;  %v4384_v52 = vrot.slane %v4376_v19, %v6125_v56 }
 0x16c   : > { %v4584_v21 = vmul.f32 %v4375_v13, %v4296_v46  ;;  %v4408_v13 = vrot.slane %v4394_v61, %v6125_v56  ;;  %v4418_v61 = vrot.slane %v4410_v9, %v6125_v56  ;;  %v4442_v9 = vrot.slane %v4428_v29, %v6125_v56 }
 0x16d   : > { %v6152_v55 = vrot.slane %v4546_v53, %v6125_v56  ;;  %v6155_v57 = vrot.slane %v4547_v54, %v6125_v56  ;;  %v4391_v53 = vrot.slane %v4377_v11, %v6125_v56 }
 0x16e   : > { %v6161_v62 = vpop.f32.mrf.mxu0  ;;  %v2587_v1 = vpop.f32.mrf.mxu1 }
 0x16f   : > { %v4562_v2 = vcombine.low %v6152_v55, %v6155_v57 }
 0x170   : > { %v6166_v3 = vpop.f32.mrf.mxu0  ;;  %v2589_v4 = vpop.f32.mrf.mxu1 }
 0x171   : > { %v4563_v7 = vcombine.low %v6161_v62, %v6166_v3  ;;  %v4647_v12 = vcombine.low %v2587_v1, %v2589_v4 }
 0x173   : > { %v4655_v20 = vrot.slane %v4647_v12, %v6125_v56  ;;  %v4297_v12 = vld [vmem:[%s6178_s28 + $0x8] sm:$0xff]  ;;  %v4570_v6 = vrot.slane %v4563_v7, %v6125_v56 }
 0x174   : > { %v2658_v18 = vpop.f32.mrf.mxu0  ;;  %v2729_v17 = vpop.f32.mrf.mxu1 }
 0x176   : > { %v2660_v14 = vpop.f32.mrf.mxu0  ;;  %v2731_v45 = vpop.f32.mrf.mxu1 }
 0x177   : > { %v4648_v51 = vcombine.low %v2658_v18, %v2660_v14  ;;  %v4664_v4 = vcombine.low %v2729_v17, %v2731_v45  ;;  %v4392_v18 = vcombine.low %v4384_v52, %v4391_v53  ;;  %v4401_v14 = vrot.slane %v4393_v58, %v6125_v56  ;;  %v4298_v58 = vld [vmem:[%s6178_s28 + $0x10] sm:$0xff] }
 0x179   : > { %v4662_v22 = vrot.slane %v4648_v51, %v6125_v56  ;;  %v4672_v23 = vrot.slane %v4664_v4, %v6125_v56  ;;  %v4585_v46 = vmul.f32 %v4392_v18, %v4297_v12 }
 0x17a   : > { %v2800_v0 = vpop.f32.mrf.mxu0  ;;  %v2871_v54 = vpop.f32.mrf.mxu1 }
 0x17b   : > { %v4663_v1 = vcombine.low %v4655_v20, %v4662_v22  ;;  %v4409_v22 = vcombine.low %v4401_v14, %v4408_v13  ;;  %v4299_v14 = vld [vmem:[%s6178_s28 + $0x18] sm:$0xff] }
 0x17c   : > { %v2802_v8 = vpop.f32.mrf.mxu0  ;;  %v2873_v16 = vpop.f32.mrf.mxu1 }
 0x17d   : > { %v4872_v19 = vadd.f32 %v4663_v1, %v4584_v21  ;;  %v4665_v11 = vcombine.low %v2800_v0, %v2802_v8  ;;  %v4681_v52 = vcombine.low %v2871_v54, %v2873_v16  ;;  %v4425_v1 = vrot.slane %v4411_v25, %v6125_v56 }
 0x17e   : > { %v4586_v8 = vmul.f32 %v4409_v22, %v4298_v58  ;;  %v4300_v22 = vld [vmem:[%s6178_s28 + $0x20] sm:$0xff] }
 0x17f   : > { %4885 = vst [vmem:[%s6194_s4] sm:$0xff] %v4872_v19  ;;  %v4679_v24 = vrot.slane %v4665_v11, %v6125_v56  ;;  %v4689_v26 = vrot.slane %v4681_v52, %v6125_v56  ;;  %v4426_v19 = vcombine.low %v4418_v61, %v4425_v1 }
 0x180   : > { %v2942_v17 = vpop.f32.mrf.mxu0  ;;  %v3013_v45 = vpop.f32.mrf.mxu1 }
 0x181   : > { %v4680_v51 = vcombine.low %v4672_v23, %v4679_v24  ;;  %v4435_v24 = vrot.slane %v4427_v28, %v6125_v56  ;;  %v4587_v32 = vmul.f32 %v4426_v19, %v4299_v14  ;;  %v4301_v19 = vld [vmem:[%s6178_s28 + $0x28] sm:$0xff] }
 0x182   : > { %v2944_v53 = vpop.f32.mrf.mxu0  ;;  %v3015_v20 = vpop.f32.mrf.mxu1 }
 0x183   : > { %v4873_v21 = vadd.f32 %v4680_v51, %v4585_v46  ;;  %v4682_v0 = vcombine.low %v2942_v17, %v2944_v53  ;;  %v4698_v18 = vcombine.low %v3013_v45, %v3015_v20  ;;  %v4444_v17 = vcombine.low %v6099_v34, %v6103_v36 }
 0x184   : > { %v4445_v45 = vcombine.low %v6101_v35, %v6105_v37  ;;  %v4443_v52 = vcombine.low %v4435_v24, %v4442_v9 }
 0x185   : > { %4886 = vst [vmem:[%s6194_s4 + $0x8] sm:$0xff] %v4873_v21  ;;  %v4696_v27 = vrot.slane %v4682_v0, %v6125_v56  ;;  %v4706_v30 = vrot.slane %v4698_v18, %v6125_v56  ;;  %v4452_v58 = vrot.slane %v4444_v17, %v6125_v56  ;;  %v4486_v17 = vrot.slane %v4478_v49, %v6125_v56  ;;  %v4303_v49 = vld [vmem:[%s6178_s28 + $0x38] sm:$0xff] }
 0x186   : > { %v3084_v54 = vpop.f32.mrf.mxu0  ;;  %v3155_v4 = vpop.f32.mrf.mxu1  ;;  %v4459_v61 = vrot.slane %v4445_v45, %v6125_v56  ;;  %v4588_v35 = vmul.f32 %v4443_v52, %v4300_v22 }
 0x187   : > { %v4697_v16 = vcombine.low %v4689_v26, %v4696_v27  ;;  %v4461_v26 = vcombine.low %v6107_v38, %v6111_v40  ;;  %v4462_v27 = vcombine.low %v6109_v39, %v6113_v41 }
 0x188   : > { %v3086_v11 = vpop.f32.mrf.mxu0  ;;  %v3157_v12 = vpop.f32.mrf.mxu1 }
 0x189   : > { %v4874_v13 = vadd.f32 %v4697_v16, %v4586_v8  ;;  %v4699_v23 = vcombine.low %v3084_v54, %v3086_v11  ;;  %v4715_v51 = vcombine.low %v3155_v4, %v3157_v12  ;;  %v4460_v8 = vcombine.low %v4452_v58, %v4459_v61 }
 0x18a   : > { %v4469_v11 = vrot.slane %v4461_v26, %v6125_v56  ;;  %v4476_v12 = vrot.slane %v4462_v27, %v6125_v56 }
 0x18b   : > { %4887 = vst [vmem:[%s6194_s4 + $0x10] sm:$0xff] %v4874_v13  ;;  %v4713_v31 = vrot.slane %v4699_v23, %v6125_v56  ;;  %v4723_v1 = vrot.slane %v4715_v51, %v6125_v56  ;;  %v4589_v41 = vmul.f32 %v4460_v8, %v4301_v19  ;;  %v4479_v13 = vcombine.low %v6117_v43, %v6121_v48 }
 0x18c   : > { %v3226_v33 = vpop.f32.mrf.mxu0  ;;  %v3297_v25 = vpop.f32.mrf.mxu1 }
 0x18d   : > { %v4714_v46 = vcombine.low %v4706_v30, %v4713_v31  ;;  %v4477_v31 = vcombine.low %v4469_v11, %v4476_v12  ;;  %v4493_v45 = vrot.slane %v4479_v13, %v6125_v56 }
 0x18e   : > { %v3228_v53 = vpop.f32.mrf.mxu0  ;;  %v3299_v20 = vpop.f32.mrf.mxu1 }
 0x18f   : > { %v4875_v21 = vadd.f32 %v4714_v46, %v4587_v32  ;;  %v4716_v0 = vcombine.low %v3226_v33, %v3228_v53  ;;  %v4732_v29 = vcombine.low %v3297_v25, %v3299_v20  ;;  %v4302_v25 = vld [vmem:[%s6178_s28 + $0x30] sm:$0xff] }
 0x190   : > { %v4590_v52 = vmul.f32 %v4477_v31, %v4302_v25  ;;  %v4306_v25 = vld [vmem:[%s6178_s28 + $0x50] sm:$0xff] }
 0x191   : > { %4888 = vst [vmem:[%s6194_s4 + $0x18] sm:$0xff] %v4875_v21  ;;  %v4730_v34 = vrot.slane %v4716_v0, %v6125_v56  ;;  %v4740_v14 = vrot.slane %v4732_v29, %v6125_v56  ;;  %v4494_v0 = vcombine.low %v4486_v17, %v4493_v45  ;;  %v4594_v5 = vmul.f32 %v4545_v50, %v4306_v25 }
 0x192   : > { %v3368_v36 = vpop.f32.mrf.mxu0  ;;  %v3439_v37 = vpop.f32.mrf.mxu1 }
 0x193   : > { %v4731_v28 = vcombine.low %v4723_v1, %v4730_v34 }
 0x194   : > { %v3370_v54 = vpop.f32.mrf.mxu0  ;;  %v3441_v4 = vpop.f32.mrf.mxu1 }
 0x195   : > { %v4876_v16 = vadd.f32 %v4731_v28, %v4588_v35  ;;  %v4733_v18 = vcombine.low %v3368_v36, %v3370_v54  ;;  %v4749_v24 = vcombine.low %v3439_v37, %v3441_v4  ;;  %v4591_v35 = vmul.f32 %v4494_v0, %v4303_v49  ;;  %v4304_v54 = vld [vmem:[%s6178_s28 + $0x40] sm:$0xff]  ;;  %v4307_v0 = vld [vmem:[%s6178_s28 + $0x58] sm:$0xff] }
 0x196   : > { %v4592_v19 = vmul.f32 %v4511_v63, %v4304_v54  ;;  %v4595_v3 = vmul.f32 %v4562_v2, %v4307_v0 }
 0x197   : > { %4889 = vst [vmem:[%s6194_s4 + $0x20] sm:$0xff] %v4876_v16  ;;  %v4747_v38 = vrot.slane %v4733_v18, %v6125_v56  ;;  %v4757_v43 = vrot.slane %v4749_v24, %v6125_v56 }
 0x198   : > { %v3510_v39 = vpop.f32.mrf.mxu0  ;;  %v3581_v40 = vpop.f32.mrf.mxu1 }
 0x199   : > { %v4748_v23 = vcombine.low %v4740_v14, %v4747_v38 }
 0x19a   : > { %v3512_v9 = vpop.f32.mrf.mxu0  ;;  %v3583_v30 = vpop.f32.mrf.mxu1 }
 0x19b   : > { %v4877_v32 = vadd.f32 %v4748_v23, %v4589_v41  ;;  %v4750_v33 = vcombine.low %v3510_v39, %v3512_v9  ;;  %v4766_v20 = vcombine.low %v3581_v40, %v3583_v30  ;;  %v4305_v41 = vld [vmem:[%s6178_s28 + $0x48] sm:$0xff] }
 0x19c   : > { %v4593_v59 = vmul.f32 %v4528_v10, %v4305_v41 }
 0x19d   : > { %4890 = vst [vmem:[%s6194_s4 + $0x28] sm:$0xff] %v4877_v32  ;;  %v4764_v48 = vrot.slane %v4750_v33, %v6125_v56  ;;  %v4774_v58 = vrot.slane %v4766_v20, %v6125_v56 }
 0x19e   : > { %v3652_v46 = vpop.f32.mrf.mxu0  ;;  %v3723_v51 = vpop.f32.mrf.mxu1 }
 0x19f   : > { %v4765_v53 = vcombine.low %v4757_v43, %v4764_v48 }
 0x1a0   : > { %v3654_v22 = vpop.f32.mrf.mxu0  ;;  %v3725_v21 = vpop.f32.mrf.mxu1 }
 0x1a1   : > { %v4878_v42 = vadd.f32 %v4765_v53, %v4590_v52  ;;  %v4767_v47 = vcombine.low %v3652_v46, %v3654_v22  ;;  %v4783_v37 = vcombine.low %v3723_v51, %v3725_v21  ;;  %v4308_v51 = vld [vmem:[%s6178_s28 + $0x60] sm:$0xf] }
 0x1a2   : > { %v4596_v15 = vmul.f32 %v4570_v6, %v4308_v51 }
 0x1a3   : > { %4891 = vst [vmem:[%s6194_s4 + $0x30] sm:$0xff] %v4878_v42  ;;  %v4781_v61 = vrot.slane %v4767_v47, %v6125_v56  ;;  %v4791_v4 = vrot.slane %v4783_v37, %v6125_v56 }
 0x1a4   : > { %v3794_v1 = vpop.f32.mrf.mxu0  ;;  %v3865_v34 = vpop.f32.mrf.mxu1 }
 0x1a5   : > { %v4782_v36 = vcombine.low %v4774_v58, %v4781_v61 }
 0x1a6   : > { %v3796_v26 = vpop.f32.mrf.mxu0  ;;  %v3867_v27 = vpop.f32.mrf.mxu1 }
 0x1a7   : > { %v4879_v28 = vadd.f32 %v4782_v36, %v4591_v35  ;;  %v4784_v29 = vcombine.low %v3794_v1, %v3796_v26  ;;  %v4800_v12 = vcombine.low %v3865_v34, %v3867_v27 }
 0x1a9   : > { %4892 = vst [vmem:[%s6194_s4 + $0x38] sm:$0xff] %v4879_v28  ;;  %v4798_v8 = vrot.slane %v4784_v29, %v6125_v56  ;;  %v4808_v13 = vrot.slane %v4800_v12, %v6125_v56 }
 0x1aa   : > { %v3936_v16 = vpop.f32.mrf.mxu0  ;;  %v4007_v18 = vpop.f32.mrf.mxu1 }
 0x1ab   : > { %v4799_v11 = vcombine.low %v4791_v4, %v4798_v8 }
 0x1ac   : > { %v3938_v14 = vpop.f32.mrf.mxu0  ;;  %v4009_v38 = vpop.f32.mrf.mxu1 }
 0x1ad   : > { %v4880_v39 = vadd.f32 %v4799_v11, %v4592_v19  ;;  %v4801_v40 = vcombine.low %v3936_v16, %v3938_v14  ;;  %v4817_v63 = vcombine.low %v4007_v18, %v4009_v38 }
 0x1af   : > { %4893 = vst [vmem:[%s6194_s4 + $0x40] sm:$0xff] %v4880_v39  ;;  %v4815_v23 = vrot.slane %v4801_v40, %v6125_v56  ;;  %v4825_v17 = vrot.slane %v4817_v63, %v6125_v56 }
 0x1b0   : > { %v4078_v24 = vpop.f32.mrf.mxu0  ;;  %v4149_v9 = vpop.f32.mrf.mxu1 }
 0x1b1   : > { %v4816_v60 = vcombine.low %v4808_v13, %v4815_v23 }
 0x1b2   : > { %v4080_v30 = vpop.f32.mrf.mxu0  ;;  %v4151_v31 = vpop.f32.mrf.mxu1 }
 0x1b3   : > { %v4881_v32 = vadd.f32 %v4816_v60, %v4593_v59  ;;  %v4818_v33 = vcombine.low %v4078_v24, %v4080_v30  ;;  %v4834_v46 = vcombine.low %v4149_v9, %v4151_v31 }
 0x1b5   : > { %4894 = vst [vmem:[%s6194_s4 + $0x48] sm:$0xff] %v4881_v32  ;;  %v4832_v45 = vrot.slane %v4818_v33, %v6125_v56  ;;  %v4842_v44 = vrot.slane %v4834_v46, %v6125_v56 }
 0x1b6   : > { %v4220_v43 = vpop.f32.mrf.mxu0  ;;  %v4291_v48 = vpop.f32.mrf.mxu1 }
 0x1b7   : > { %v4833_v10 = vcombine.low %v4825_v17, %v4832_v45 }
 0x1b8   : > { %v4222_v52 = vpop.f32.mrf.mxu0  ;;  %v4293_v53 = vpop.f32.mrf.mxu1 }
 0x1b9   : > { %v4882_v20 = vadd.f32 %v4833_v10, %v4594_v5  ;;  %v4835_v22 = vcombine.low %v4220_v43, %v4222_v52  ;;  %v4851_v21 = vcombine.low %v4291_v48, %v4293_v53 }
 0x1bb   : > { %4895 = vst [vmem:[%s6194_s4 + $0x50] sm:$0xff] %v4882_v20  ;;  %v4849_v50 = vrot.slane %v4835_v22, %v6125_v56  ;;  %v4858_v62 = vrot.slane %v4851_v21, %v6125_v56 }
 0x1bd   : > { %v4850_v7 = vcombine.low %v4842_v44, %v4849_v50  ;;  %v4884_v42 = vadd.f32 %v4858_v62, %v4596_v15 }
 0x1bf   : > { %v4883_v47 = vadd.f32 %v4850_v7, %v4595_v3  ;;  %4897 = vst [vmem:[%s6194_s4 + $0x60] sm:$0xf] %v4884_v42 }
 0x1c1   : > { %4896 = vst [vmem:[%s6194_s4 + $0x58] sm:$0xff] %v4883_v47 }
 0x1c2   : > { %5345 = shalt.err (!%p5342_p11)
}
 0x1c3   : > { %s5346_s21 = scalar_lea.hbm %s4911_s10, 1600  ;;  %s5350_s23 = scalar_lea.hbm %s6329_s3, 3200 }
 0x1c4   : > { %p5347_p3 = scmp.ne.s32.totalorder %s4911_s10, %s5346_s21  ;;  %p5351_p13 = scmp.lt.s32.totalorder %s4911_s10, %s6329_s3 }
 0x1c5   : > { %p5352_p10 = scmp.lt.s32.totalorder %s5350_s23, %s5346_s21 }
 0x1c6   : > { %p5348_p12 = pnand %p5347_p3, %p6345_p4 }
 0x1c7   : > { %p5353_p6 = por %p5352_p10, %p5351_p13 }
 0x1c8   : > { %p5349_p8 = pneg %p5348_p12 }
 0x1ca   : > { %p5354_p2 = pnand %p5353_p6, %p5349_p8 }
 0x1cc   : > { %5357 = shalt.err (!%p5354_p2)
}
 0x1cd   : > { %5191 = dma.vmem_to_hbm [thread:$0]  (%p6345_p4), %s4914_s20, 1600, %s4911_s10, %s4899_s9  }
 0x1ce PF: > { %s4925_s30 = sand.u32 1, %s5388_s12   ;;  %p6346_p9 = scmp.ne.s32.totalorder %s6337_s29, 0 }
 0x1cf   : > { %p6347_p1 = scmp.ge.s32.totalorder %s5400_s15, 2  ;;  %s4926_s28 = scalar_lea.sflag [#allocation4], %s4925_s30 }
 0x1d1   : > { %p5205_p7 = pnand %p6347_p1, %p6346_p9 }
 0x1d3   : > { %p5206_p0 = pneg %p5205_p7 }
 0x1d5   : > { %5383 = dma.done.wait (%p5206_p0), %s4926_s28, 1600  }
 0x1d6   : > { %5385 = vsyncadd (%p5206_p0), %s4926_s28, 4294965696  ;;  %p17_p5 = scmp.ge.s32.totalorder %s5452_s16, 4   ;;  %s6348_s12 = smov %s5392_s13 }
 0x1d7   : > { %s6349_s13 = smov %s5396_s14  ;;  %s6350_s14 = smov %s5463_s19 }
 0x1d8   : > { %s6351_s15 = smov %s5452_s16  ;;  %19 = sbr.rel (!%p17_p5) target bundleno = 6 (0x6), region = 93 }
 0x1dd   :  { %4931 = vsyncpa [#allocation3], 1 }
 0x1de   :  { %4933 = vsyncpa [#allocation3 + $0x1], 1 }
 0x1df   :  { %4934 = vsyncpa [#allocation6], 1 }
 0x1e0   :  { %4936 = vsyncpa [#allocation6 + $0x1], 1 }
 0x1e1   :  { %4937 = vsyncpa [#allocation4], 1 }
 0x1e2   :  { %4939 = vsyncpa [#allocation4 + $0x1], 1 }

</bundles_post_ra>
